<compile_context>
chip_gen: v7x
topology: tpu7x:2x2x1
jax: 0.10.0
libtpu: 0.0.40
codegen_flags: <defaults>
</compile_context>

<pallas_src>
import functools

import jax
import jax.numpy as jnp
from jax.experimental import pallas as pl
from jax.experimental.pallas import tpu as pltpu

_BN_EPS = 1e-5
_LANE = 128
_VMEM_LIMIT = 32 * 1024 * 1024  # explicit scoped-VMEM limit, safe on v5e/v6e/v7x


def _round_up(x, m):
    return (x + m - 1) // m * m


# ----------------------------- Pallas kernels ------------------------------ #

def _maxpool_pad_kernel(x_ref, o_ref, *, cp):
    # x_ref: (1, H2, 2, W2, 2*cp) bf16 -- free reshape of NHWC, no HBM relayout.
    # o_ref: (1, H2+2, W2+2, cp)  bf16 -- pooled result with a zero halo ring.
    v = jnp.maximum(x_ref[0, :, 0], x_ref[0, :, 1])        # vertical max (H2, W2, 2cp)
    pooled = jnp.maximum(v[..., :cp], v[..., cp:])         # horizontal max (lane-aligned slice)
    h2, w2 = pooled.shape[0], pooled.shape[1]
    o_ref[0] = jnp.zeros(o_ref.shape[1:], o_ref.dtype)     # zero halo ring
    o_ref[0, 1:1 + h2, 1:1 + w2, :] = pooled.astype(o_ref.dtype)


def _conv_stats_kernel(x_ref, w_ref, b_ref, y_ref, stats_ref, *, out_h, out_w):
    # x_ref:     (1, H+2, W+2, Cp_in) bf16  haloed activation block (one sample)
    # w_ref:     (9, Cp_in, Cp_out)   bf16  tap-major weights (resident)
    # b_ref:     (1, Cp_out)          f32   bias
    # y_ref:     (1, H, W, Cp_out)    f32   pre-BN activations (this sample)
    # stats_ref: (2, Cp_out)          f32   global [sum; sum_sq], resident across grid
    cp_in = w_ref.shape[1]
    cp_out = w_ref.shape[2]

    acc = jnp.zeros((out_h * out_w, cp_out), jnp.float32)
    for t in range(9):                                     # 9-tap conv: 9 MXU matmuls
        dy, dx = divmod(t, 3)
        patch = x_ref[0, dy:dy + out_h, dx:dx + out_w, :]  # (H, W, Cp_in)
        patch = patch.reshape(out_h * out_w, cp_in)
        acc = acc + jnp.dot(patch, w_ref[t], preferred_element_type=jnp.float32)
    acc = acc + b_ref[...]

    y_ref[0] = acc.reshape(out_h, out_w, cp_out)

    @pl.when(pl.program_id(0) == 0)
    def _init():
        stats_ref[...] = jnp.zeros_like(stats_ref)

    # Single sweep: per-channel sum and sum-of-squares (f32 accumulators).
    tile_stats = jnp.concatenate(
        [jnp.sum(acc, axis=0, keepdims=True),
         jnp.sum(acc * acc, axis=0, keepdims=True)], axis=0)  # (2, Cp_out)
    stats_ref[...] += tile_stats


def _bn_prelu_kernel(y_ref, stats_ref, g_ref, bt_ref, a_ref, o_ref, *,
                     inv_count, pad_border):
    # Finalize BN with global batch statistics (biased variance) + PReLU.
    mean = stats_ref[0:1, :] * inv_count                           # (1, Cp)
    var = jnp.maximum(stats_ref[1:2, :] * inv_count - mean * mean, 0.0)
    scale = g_ref[...] * jax.lax.rsqrt(var + _BN_EPS)
    shift = bt_ref[...] - mean * scale

    y = y_ref[0]                                                   # (H, W, Cp) f32
    z = y * scale + shift
    out = jnp.where(z > 0, z, z * a_ref[...])                      # per-channel PReLU

    if pad_border:
        h, w = y.shape[0], y.shape[1]
        o_ref[0] = jnp.zeros(o_ref.shape[1:], o_ref.dtype)         # halo for next conv
        o_ref[0, 1:1 + h, 1:1 + w, :] = out.astype(o_ref.dtype)
    else:
        o_ref[0] = out.astype(o_ref.dtype)


# ------------------------------ kernel wrappers ----------------------------- #

def maxpool2x2_pad(x):
    """x: (N, H, W, Cp) bf16, lane-padded channels -> (N, H//2+2, W//2+2, Cp)."""
    N, H, W, Cp = x.shape
    H2, W2 = H // 2, W // 2
    xr = x.reshape(N, H2, 2, W2, 2 * Cp)        # free row-major reshape, no relayout
    return pl.pallas_call(
        functools.partial(_maxpool_pad_kernel, cp=Cp),
        grid=(N,),
        in_specs=[pl.BlockSpec((1, H2, 2, W2, 2 * Cp),
                               lambda n: (n, 0, 0, 0, 0))],
        out_specs=pl.BlockSpec((1, H2 + 2, W2 + 2, Cp), lambda n: (n, 0, 0, 0)),
        out_shape=jax.ShapeDtypeStruct((N, H2 + 2, W2 + 2, Cp), x.dtype),
        compiler_params=pltpu.CompilerParams(
            dimension_semantics=("parallel",),
            vmem_limit_bytes=_VMEM_LIMIT),
    )(xr)


def conv3x3_stats(x_pad, w9, b):
    """Phase 1: conv3x3 + bias, plus global per-channel sum / sum_sq.

    x_pad: (N, H+2, W+2, Cp_in) bf16 with zero spatial halo.
    w9:    (9, Cp_in, Cp_out)   bf16 tap-major weights.
    b:     (1, Cp_out)          f32 bias.
    Returns (pre_bn (N,H,W,Cp_out) f32, stats (2,Cp_out) f32).
    """
    N, Hp2, Wp2, Cp_in = x_pad.shape
    H, W = Hp2 - 2, Wp2 - 2
    Cp_out = w9.shape[2]
    kernel = functools.partial(_conv_stats_kernel, out_h=H, out_w=W)
    return pl.pallas_call(
        kernel,
        grid=(N,),
        in_specs=[
            pl.BlockSpec((1, Hp2, Wp2, Cp_in), lambda n: (n, 0, 0, 0)),
            pl.BlockSpec((9, Cp_in, Cp_out), lambda n: (0, 0, 0)),
            pl.BlockSpec((1, Cp_out), lambda n: (0, 0)),
        ],
        out_specs=(
            pl.BlockSpec((1, H, W, Cp_out), lambda n: (n, 0, 0, 0)),
            pl.BlockSpec((2, Cp_out), lambda n: (0, 0)),     # resident accumulator
        ),
        out_shape=(
            jax.ShapeDtypeStruct((N, H, W, Cp_out), jnp.float32),
            jax.ShapeDtypeStruct((2, Cp_out), jnp.float32),
        ),
        compiler_params=pltpu.CompilerParams(
            dimension_semantics=("arbitrary",),   # stats accumulate across this axis
            vmem_limit_bytes=_VMEM_LIMIT),
    )(x_pad, w9, b)


def bn_prelu(pre, stats, g, bt, a, *, pad_border):
    """Phase 2: BatchNorm (batch stats) + PReLU; optionally emits a zero halo."""
    N, H, W, Cp = pre.shape
    inv_count = 1.0 / float(N * H * W)
    if pad_border:
        out_shape = (N, H + 2, W + 2, Cp)
        out_block = (1, H + 2, W + 2, Cp)
    else:
        out_shape = (N, H, W, Cp)
        out_block = (1, H, W, Cp)
    kernel = functools.partial(_bn_prelu_kernel, inv_count=inv_count,
                               pad_border=pad_border)
    return pl.pallas_call(
        kernel,
        grid=(N,),
        in_specs=[
            pl.BlockSpec((1, H, W, Cp), lambda n: (n, 0, 0, 0)),
            pl.BlockSpec((2, Cp), lambda n: (0, 0)),
            pl.BlockSpec((1, Cp), lambda n: (0, 0)),
            pl.BlockSpec((1, Cp), lambda n: (0, 0)),
            pl.BlockSpec((1, Cp), lambda n: (0, 0)),
        ],
        out_specs=pl.BlockSpec(out_block, lambda n: (n, 0, 0, 0)),
        out_shape=jax.ShapeDtypeStruct(out_shape, jnp.bfloat16),
        compiler_params=pltpu.CompilerParams(
            dimension_semantics=("parallel",),    # fully parallel (v7x megacore)
            vmem_limit_bytes=_VMEM_LIMIT),
    )(pre, stats, g, bt, a)


# ---------------------------- parameters (glue) ------------------------------ #

def init_vnet_down_block(key, in_channels, out_channels, layers):
    """Deterministic synthetic parameters (shapes match the PyTorch module)."""
    params = []
    cin = in_channels
    for _ in range(layers):
        key, wk, bk = jax.random.split(key, 3)
        fan_in = cin * 9
        w = jax.random.normal(wk, (3, 3, cin, out_channels), jnp.float32)
        w = w * (2.0 / fan_in) ** 0.5
        b = 0.01 * jax.random.normal(bk, (out_channels,), jnp.float32)
        gamma = jnp.ones((out_channels,), jnp.float32)        # BN weight
        beta = jnp.zeros((out_channels,), jnp.float32)        # BN bias
        alpha = jnp.full((out_channels,), 0.25, jnp.float32)  # nn.PReLU(out_channels)
        params.append((w, b, gamma, beta, alpha))
        cin = out_channels
    return params


def prepare_params(params, in_channels):
    """Lane-pad channels to 128 and reshape conv weights to tap-major bf16."""
    prepped = []
    cin = in_channels
    for (w, b, g, bt, a) in params:
        cout = w.shape[-1]
        cp_in = _round_up(cin, _LANE)
        cp_out = _round_up(cout, _LANE)
        wp = jnp.zeros((3, 3, cp_in, cp_out), jnp.float32)
        wp = wp.at[:, :, :cin, :cout].set(w)
        wp = wp.reshape(9, cp_in, cp_out).astype(jnp.bfloat16)

        def vec(v, cout=cout, cp_out=cp_out):
            return jnp.zeros((1, cp_out), jnp.float32).at[0, :cout].set(v)

        prepped.append((wp, vec(b), vec(g), vec(bt), vec(a)))
        cin = cout
    return prepped


# --------------------------------- forward ----------------------------------- #

@functools.partial(jax.jit, static_argnames=("out_channels",))
def vnet_down_block_forward(x_nchw, prepped_params, out_channels):
    """Matches VNetDownBlock.forward: maxpool(2,2) then VNetConvBlock."""
    N, Cin, H, W = x_nchw.shape
    assert H % 2 == 0 and W % 2 == 0
    cp_in = _round_up(Cin, _LANE)

    # NCHW -> NHWC once at the boundary; lane-pad channels; bf16 activations.
    x = jnp.transpose(x_nchw, (0, 2, 3, 1))
    x = jnp.pad(x, ((0, 0), (0, 0), (0, 0), (0, cp_in - Cin))).astype(jnp.bfloat16)

    act = maxpool2x2_pad(x)                    # (N, H/2+2, W/2+2, cp_in), zero halo
    n_layers = len(prepped_params)
    for i, (w9, b, g, bt, a) in enumerate(prepped_params):
        pre, stats = conv3x3_stats(act, w9, b)
        act = bn_prelu(pre, stats, g, bt, a, pad_border=(i + 1 < n_layers))

    out = act[..., :out_channels]              # drop lane padding
    return jnp.transpose(out, (0, 3, 1, 2)).astype(jnp.float32)   # back to NCHW


# ---------------------------------- main ------------------------------------- #

if __name__ == "__main__":
    key = jax.random.PRNGKey(0)
    key, xk, pk = jax.random.split(key, 3)

    in_channels, out_channels, layers = 4, 8, 2
    x = jax.random.normal(xk, (2, in_channels, 16, 16), jnp.float32)   # NCHW

    raw_params = init_vnet_down_block(pk, in_channels, out_channels, layers)
    params = prepare_params(raw_params, in_channels)

    out = vnet_down_block_forward(x, params, out_channels=out_channels)
    out = jax.block_until_ready(out)

    assert out.shape == (2, out_channels, 8, 8), out.shape
    assert bool(jnp.all(jnp.isfinite(out)))
    print("KERNEL_OK")
</pallas_src>

<mosaic_0001>
module attributes {stable_mosaic.version = 11 : i64} {
  func.func @_maxpool_pad_kernel(%arg0: i32, %arg1: memref<1x8x2x8x256xbf16, #tpu.memory_space<vmem>>, %arg2: memref<1x10x10x128xbf16, #tpu.memory_space<vmem>>) attributes {dimension_semantics = [#tpu.dimension_semantics<parallel>], iteration_bounds = array<i64: 2>, scalar_prefetch = 0 : i64, scratch_operands = 0 : i64, tpu.core_type = #tpu.core_type<tc>, window_params = [{transform_indices = @transform_0, window_bounds = array<i64: 1, 8, 2, 8, 256>}, {transform_indices = @transform_1, window_bounds = array<i64: 1, 10, 10, 128>}]} {
    %c0 = arith.constant 0 : index
    %c0_0 = arith.constant 0 : index
    %c0_1 = arith.constant 0 : index
    %c0_2 = arith.constant 0 : index
    %c0_3 = arith.constant 0 : index
    %0 = vector.load %arg1[%c0, %c0_0, %c0_1, %c0_2, %c0_3] : memref<1x8x2x8x256xbf16, #tpu.memory_space<vmem>>, vector<1x8x1x8x256xbf16>
    %1 = vector.shape_cast %0 : vector<1x8x1x8x256xbf16> to vector<8x8x256xbf16>
    %c0_4 = arith.constant 0 : index
    %c0_5 = arith.constant 0 : index
    %c1 = arith.constant 1 : index
    %c0_6 = arith.constant 0 : index
    %c0_7 = arith.constant 0 : index
    %2 = vector.load %arg1[%c0_4, %c0_5, %c1, %c0_6, %c0_7] : memref<1x8x2x8x256xbf16, #tpu.memory_space<vmem>>, vector<1x8x1x8x256xbf16>
    %3 = vector.shape_cast %2 : vector<1x8x1x8x256xbf16> to vector<8x8x256xbf16>
    %4 = arith.maximumf %1, %3 : vector<8x8x256xbf16>
    %5 = vector.extract_strided_slice %4 {offsets = [0, 0, 0], sizes = [8, 8, 128], strides = [1, 1, 1]} : vector<8x8x256xbf16> to vector<8x8x128xbf16>
    %6 = vector.extract_strided_slice %4 {offsets = [0, 0, 128], sizes = [8, 8, 128], strides = [1, 1, 1]} : vector<8x8x256xbf16> to vector<8x8x128xbf16>
    %7 = arith.maximumf %5, %6 : vector<8x8x128xbf16>
    %cst = arith.constant 0.000000e+00 : bf16
    %8 = vector.broadcast %cst : bf16 to vector<10x10x128xbf16>
    %c0_8 = arith.constant 0 : index
    %c0_9 = arith.constant 0 : index
    %c0_10 = arith.constant 0 : index
    %c0_11 = arith.constant 0 : index
    %9 = vector.load %arg2[%c0_8, %c0_9, %c0_10, %c0_11] : memref<1x10x10x128xbf16, #tpu.memory_space<vmem>>, vector<1x10x10x128xbf16>
    %10 = vector.shape_cast %9 : vector<1x10x10x128xbf16> to vector<10x10x128xbf16>
    %11 = vector.shape_cast %8 : vector<10x10x128xbf16> to vector<1x10x10x128xbf16>
    tpu.vector_store %arg2[%c0_8, %c0_9, %c0_10, %c0_11], %11 {strides = array<i32>} : memref<1x10x10x128xbf16, #tpu.memory_space<vmem>>, vector<1x10x10x128xbf16>,
    %c0_12 = arith.constant 0 : index
    %c1_13 = arith.constant 1 : index
    %c1_14 = arith.constant 1 : index
    %c0_15 = arith.constant 0 : index
    %12 = vector.load %arg2[%c0_12, %c1_13, %c1_14, %c0_15] : memref<1x10x10x128xbf16, #tpu.memory_space<vmem>>, vector<1x8x8x128xbf16>
    %13 = vector.shape_cast %12 : vector<1x8x8x128xbf16> to vector<8x8x128xbf16>
    %14 = vector.shape_cast %7 : vector<8x8x128xbf16> to vector<1x8x8x128xbf16>
    tpu.vector_store %arg2[%c0_12, %c1_13, %c1_14, %c0_15], %14 {strides = array<i32>} : memref<1x10x10x128xbf16, #tpu.memory_space<vmem>>, vector<1x8x8x128xbf16>,
    return
  }
  func.func @transform_0(%arg0: i32) -> (i32, i32, i32, i32, i32) {
    %c0_i32 = arith.constant 0 : i32
    %c0_i32_0 = arith.constant 0 : i32
    %c0_i32_1 = arith.constant 0 : i32
    %c0_i32_2 = arith.constant 0 : i32
    %c0_i32_3 = arith.constant 0 : i32
    return %arg0, %c0_i32, %c0_i32_0, %c0_i32_1, %c0_i32_2 : i32, i32, i32, i32, i32
  }
  func.func @transform_1(%arg0: i32) -> (i32, i32, i32, i32) {
    %c0_i32 = arith.constant 0 : i32
    %c0_i32_0 = arith.constant 0 : i32
    %c0_i32_1 = arith.constant 0 : i32
    %c0_i32_2 = arith.constant 0 : i32
    return %arg0, %c0_i32, %c0_i32_0, %c0_i32_1 : i32, i32, i32, i32
  }
}

module attributes {stable_mosaic.version = 11 : i64} {
  func.func @_conv_stats_kernel(%arg0: i32, %arg1: memref<1x10x10x128xbf16, #tpu.memory_space<vmem>>, %arg2: memref<9x128x128xbf16, #tpu.memory_space<vmem>>, %arg3: memref<1x128xf32, #tpu.memory_space<vmem>>, %arg4: memref<1x8x8x128xf32, #tpu.memory_space<vmem>>, %arg5: memref<2x128xf32, #tpu.memory_space<vmem>>) attributes {dimension_semantics = [#tpu.dimension_semantics<arbitrary>], iteration_bounds = array<i64: 2>, scalar_prefetch = 0 : i64, scratch_operands = 0 : i64, tpu.core_type = #tpu.core_type<tc>, window_params = [{transform_indices = @transform_0, window_bounds = array<i64: 1, 10, 10, 128>}, {pipeline_mode = #tpu.pipeline_mode<synchronous>, transform_indices = @transform_1, window_bounds = array<i64: 9, 128, 128>}, {pipeline_mode = #tpu.pipeline_mode<synchronous>, transform_indices = @transform_2, window_bounds = array<i64: 1, 128>}, {transform_indices = @transform_3, window_bounds = array<i64: 1, 8, 8, 128>}, {pipeline_mode = #tpu.pipeline_mode<synchronous>, transform_indices = @transform_4, window_bounds = array<i64: 2, 128>}]} {
    %cst = arith.constant 0.000000e+00 : f32
    %0 = vector.broadcast %cst : f32 to vector<64x128xf32>
    %c0 = arith.constant 0 : index
    %c0_0 = arith.constant 0 : index
    %c0_1 = arith.constant 0 : index
    %c0_2 = arith.constant 0 : index
    %1 = vector.load %arg1[%c0, %c0_0, %c0_1, %c0_2] : memref<1x10x10x128xbf16, #tpu.memory_space<vmem>>, vector<1x8x8x128xbf16>
    %2 = vector.shape_cast %1 : vector<1x8x8x128xbf16> to vector<8x8x128xbf16>
    %3 = vector.shape_cast %2 : vector<8x8x128xbf16> to vector<64x128xbf16>
    %c0_3 = arith.constant 0 : index
    %c0_4 = arith.constant 0 : index
    %c0_5 = arith.constant 0 : index
    %4 = vector.load %arg2[%c0_3, %c0_4, %c0_5] : memref<9x128x128xbf16, #tpu.memory_space<vmem>>, vector<1x128x128xbf16>
    %5 = vector.shape_cast %4 : vector<1x128x128xbf16> to vector<128x128xbf16>
    %cst_6 = arith.constant dense<0.000000e+00> : vector<64x128xf32>
    %6 = tpu.matmul %3, %5, %cst_6 {dimension_numbers = #tpu.dot_dimension_numbers<[1], [0], [0], [1], [0, 0, 1, 1], [], []>} : vector<64x128xbf16>, vector<128x128xbf16>, vector<64x128xf32> -> vector<64x128xf32>
    %7 = arith.addf %0, %6 : vector<64x128xf32>
    %c0_7 = arith.constant 0 : index
    %c0_8 = arith.constant 0 : index
    %c1 = arith.constant 1 : index
    %c0_9 = arith.constant 0 : index
    %8 = vector.load %arg1[%c0_7, %c0_8, %c1, %c0_9] : memref<1x10x10x128xbf16, #tpu.memory_space<vmem>>, vector<1x8x8x128xbf16>
    %9 = vector.shape_cast %8 : vector<1x8x8x128xbf16> to vector<8x8x128xbf16>
    %10 = vector.shape_cast %9 : vector<8x8x128xbf16> to vector<64x128xbf16>
    %c1_10 = arith.constant 1 : index
    %c0_11 = arith.constant 0 : index
    %c0_12 = arith.constant 0 : index
    %11 = vector.load %arg2[%c1_10, %c0_11, %c0_12] : memref<9x128x128xbf16, #tpu.memory_space<vmem>>, vector<1x128x128xbf16>
    %12 = vector.shape_cast %11 : vector<1x128x128xbf16> to vector<128x128xbf16>
    %cst_13 = arith.constant dense<0.000000e+00> : vector<64x128xf32>
    %13 = tpu.matmul %10, %12, %cst_13 {dimension_numbers = #tpu.dot_dimension_numbers<[1], [0], [0], [1], [0, 0, 1, 1], [], []>} : vector<64x128xbf16>, vector<128x128xbf16>, vector<64x128xf32> -> vector<64x128xf32>
    %14 = arith.addf %7, %13 : vector<64x128xf32>
    %c0_14 = arith.constant 0 : index
    %c0_15 = arith.constant 0 : index
    %c2 = arith.constant 2 : index
    %c0_16 = arith.constant 0 : index
    %15 = vector.load %arg1[%c0_14, %c0_15, %c2, %c0_16] : memref<1x10x10x128xbf16, #tpu.memory_space<vmem>>, vector<1x8x8x128xbf16>
    %16 = vector.shape_cast %15 : vector<1x8x8x128xbf16> to vector<8x8x128xbf16>
    %17 = vector.shape_cast %16 : vector<8x8x128xbf16> to vector<64x128xbf16>
    %c2_17 = arith.constant 2 : index
    %c0_18 = arith.constant 0 : index
    %c0_19 = arith.constant 0 : index
    %18 = vector.load %arg2[%c2_17, %c0_18, %c0_19] : memref<9x128x128xbf16, #tpu.memory_space<vmem>>, vector<1x128x128xbf16>
    %19 = vector.shape_cast %18 : vector<1x128x128xbf16> to vector<128x128xbf16>
    %cst_20 = arith.constant dense<0.000000e+00> : vector<64x128xf32>
    %20 = tpu.matmul %17, %19, %cst_20 {dimension_numbers = #tpu.dot_dimension_numbers<[1], [0], [0], [1], [0, 0, 1, 1], [], []>} : vector<64x128xbf16>, vector<128x128xbf16>, vector<64x128xf32> -> vector<64x128xf32>
    %21 = arith.addf %14, %20 : vector<64x128xf32>
    %c0_21 = arith.constant 0 : index
    %c1_22 = arith.constant 1 : index
    %c0_23 = arith.constant 0 : index
    %c0_24 = arith.constant 0 : index
    %22 = vector.load %arg1[%c0_21, %c1_22, %c0_23, %c0_24] : memref<1x10x10x128xbf16, #tpu.memory_space<vmem>>, vector<1x8x8x128xbf16>
    %23 = vector.shape_cast %22 : vector<1x8x8x128xbf16> to vector<8x8x128xbf16>
    %24 = vector.shape_cast %23 : vector<8x8x128xbf16> to vector<64x128xbf16>
    %c3 = arith.constant 3 : index
    %c0_25 = arith.constant 0 : index
    %c0_26 = arith.constant 0 : index
    %25 = vector.load %arg2[%c3, %c0_25, %c0_26] : memref<9x128x128xbf16, #tpu.memory_space<vmem>>, vector<1x128x128xbf16>
    %26 = vector.shape_cast %25 : vector<1x128x128xbf16> to vector<128x128xbf16>
    %cst_27 = arith.constant dense<0.000000e+00> : vector<64x128xf32>
    %27 = tpu.matmul %24, %26, %cst_27 {dimension_numbers = #tpu.dot_dimension_numbers<[1], [0], [0], [1], [0, 0, 1, 1], [], []>} : vector<64x128xbf16>, vector<128x128xbf16>, vector<64x128xf32> -> vector<64x128xf32>
    %28 = arith.addf %21, %27 : vector<64x128xf32>
    %c0_28 = arith.constant 0 : index
    %c1_29 = arith.constant 1 : index
    %c1_30 = arith.constant 1 : index
    %c0_31 = arith.constant 0 : index
    %29 = vector.load %arg1[%c0_28, %c1_29, %c1_30, %c0_31] : memref<1x10x10x128xbf16, #tpu.memory_space<vmem>>, vector<1x8x8x128xbf16>
    %30 = vector.shape_cast %29 : vector<1x8x8x128xbf16> to vector<8x8x128xbf16>
    %31 = vector.shape_cast %30 : vector<8x8x128xbf16> to vector<64x128xbf16>
    %c4 = arith.constant 4 : index
    %c0_32 = arith.constant 0 : index
    %c0_33 = arith.constant 0 : index
    %32 = vector.load %arg2[%c4, %c0_32, %c0_33] : memref<9x128x128xbf16, #tpu.memory_space<vmem>>, vector<1x128x128xbf16>
    %33 = vector.shape_cast %32 : vector<1x128x128xbf16> to vector<128x128xbf16>
    %cst_34 = arith.constant dense<0.000000e+00> : vector<64x128xf32>
    %34 = tpu.matmul %31, %33, %cst_34 {dimension_numbers = #tpu.dot_dimension_numbers<[1], [0], [0], [1], [0, 0, 1, 1], [], []>} : vector<64x128xbf16>, vector<128x128xbf16>, vector<64x128xf32> -> vector<64x128xf32>
    %35 = arith.addf %28, %34 : vector<64x128xf32>
    %c0_35 = arith.constant 0 : index
    %c1_36 = arith.constant 1 : index
    %c2_37 = arith.constant 2 : index
    %c0_38 = arith.constant 0 : index
    %36 = vector.load %arg1[%c0_35, %c1_36, %c2_37, %c0_38] : memref<1x10x10x128xbf16, #tpu.memory_space<vmem>>, vector<1x8x8x128xbf16>
    %37 = vector.shape_cast %36 : vector<1x8x8x128xbf16> to vector<8x8x128xbf16>
    %38 = vector.shape_cast %37 : vector<8x8x128xbf16> to vector<64x128xbf16>
    %c5 = arith.constant 5 : index
    %c0_39 = arith.constant 0 : index
    %c0_40 = arith.constant 0 : index
    %39 = vector.load %arg2[%c5, %c0_39, %c0_40] : memref<9x128x128xbf16, #tpu.memory_space<vmem>>, vector<1x128x128xbf16>
    %40 = vector.shape_cast %39 : vector<1x128x128xbf16> to vector<128x128xbf16>
    %cst_41 = arith.constant dense<0.000000e+00> : vector<64x128xf32>
    %41 = tpu.matmul %38, %40, %cst_41 {dimension_numbers = #tpu.dot_dimension_numbers<[1], [0], [0], [1], [0, 0, 1, 1], [], []>} : vector<64x128xbf16>, vector<128x128xbf16>, vector<64x128xf32> -> vector<64x128xf32>
    %42 = arith.addf %35, %41 : vector<64x128xf32>
    %c0_42 = arith.constant 0 : index
    %c2_43 = arith.constant 2 : index
    %c0_44 = arith.constant 0 : index
    %c0_45 = arith.constant 0 : index
    %43 = vector.load %arg1[%c0_42, %c2_43, %c0_44, %c0_45] : memref<1x10x10x128xbf16, #tpu.memory_space<vmem>>, vector<1x8x8x128xbf16>
    %44 = vector.shape_cast %43 : vector<1x8x8x128xbf16> to vector<8x8x128xbf16>
    %45 = vector.shape_cast %44 : vector<8x8x128xbf16> to vector<64x128xbf16>
    %c6 = arith.constant 6 : index
    %c0_46 = arith.constant 0 : index
    %c0_47 = arith.constant 0 : index
    %46 = vector.load %arg2[%c6, %c0_46, %c0_47] : memref<9x128x128xbf16, #tpu.memory_space<vmem>>, vector<1x128x128xbf16>
    %47 = vector.shape_cast %46 : vector<1x128x128xbf16> to vector<128x128xbf16>
    %cst_48 = arith.constant dense<0.000000e+00> : vector<64x128xf32>
    %48 = tpu.matmul %45, %47, %cst_48 {dimension_numbers = #tpu.dot_dimension_numbers<[1], [0], [0], [1], [0, 0, 1, 1], [], []>} : vector<64x128xbf16>, vector<128x128xbf16>, vector<64x128xf32> -> vector<64x128xf32>
    %49 = arith.addf %42, %48 : vector<64x128xf32>
    %c0_49 = arith.constant 0 : index
    %c2_50 = arith.constant 2 : index
    %c1_51 = arith.constant 1 : index
    %c0_52 = arith.constant 0 : index
    %50 = vector.load %arg1[%c0_49, %c2_50, %c1_51, %c0_52] : memref<1x10x10x128xbf16, #tpu.memory_space<vmem>>, vector<1x8x8x128xbf16>
    %51 = vector.shape_cast %50 : vector<1x8x8x128xbf16> to vector<8x8x128xbf16>
    %52 = vector.shape_cast %51 : vector<8x8x128xbf16> to vector<64x128xbf16>
    %c7 = arith.constant 7 : index
    %c0_53 = arith.constant 0 : index
    %c0_54 = arith.constant 0 : index
    %53 = vector.load %arg2[%c7, %c0_53, %c0_54] : memref<9x128x128xbf16, #tpu.memory_space<vmem>>, vector<1x128x128xbf16>
    %54 = vector.shape_cast %53 : vector<1x128x128xbf16> to vector<128x128xbf16>
    %cst_55 = arith.constant dense<0.000000e+00> : vector<64x128xf32>
    %55 = tpu.matmul %52, %54, %cst_55 {dimension_numbers = #tpu.dot_dimension_numbers<[1], [0], [0], [1], [0, 0, 1, 1], [], []>} : vector<64x128xbf16>, vector<128x128xbf16>, vector<64x128xf32> -> vector<64x128xf32>
    %56 = arith.addf %49, %55 : vector<64x128xf32>
    %c0_56 = arith.constant 0 : index
    %c2_57 = arith.constant 2 : index
    %c2_58 = arith.constant 2 : index
    %c0_59 = arith.constant 0 : index
    %57 = vector.load %arg1[%c0_56, %c2_57, %c2_58, %c0_59] : memref<1x10x10x128xbf16, #tpu.memory_space<vmem>>, vector<1x8x8x128xbf16>
    %58 = vector.shape_cast %57 : vector<1x8x8x128xbf16> to vector<8x8x128xbf16>
    %59 = vector.shape_cast %58 : vector<8x8x128xbf16> to vector<64x128xbf16>
    %c8 = arith.constant 8 : index
    %c0_60 = arith.constant 0 : index
    %c0_61 = arith.constant 0 : index
    %60 = vector.load %arg2[%c8, %c0_60, %c0_61] : memref<9x128x128xbf16, #tpu.memory_space<vmem>>, vector<1x128x128xbf16>
    %61 = vector.shape_cast %60 : vector<1x128x128xbf16> to vector<128x128xbf16>
    %cst_62 = arith.constant dense<0.000000e+00> : vector<64x128xf32>
    %62 = tpu.matmul %59, %61, %cst_62 {dimension_numbers = #tpu.dot_dimension_numbers<[1], [0], [0], [1], [0, 0, 1, 1], [], []>} : vector<64x128xbf16>, vector<128x128xbf16>, vector<64x128xf32> -> vector<64x128xf32>
    %63 = arith.addf %56, %62 : vector<64x128xf32>
    %c0_63 = arith.constant 0 : index
    %c0_64 = arith.constant 0 : index
    %64 = vector.load %arg3[%c0_63, %c0_64] : memref<1x128xf32, #tpu.memory_space<vmem>>, vector<1x128xf32>
    %65 = vector.broadcast %64 : vector<1x128xf32> to vector<64x128xf32>
    %66 = arith.addf %63, %65 : vector<64x128xf32>
    %67 = vector.shape_cast %66 : vector<64x128xf32> to vector<8x8x128xf32>
    %c0_65 = arith.constant 0 : index
    %c0_66 = arith.constant 0 : index
    %c0_67 = arith.constant 0 : index
    %c0_68 = arith.constant 0 : index
    %68 = vector.load %arg4[%c0_65, %c0_66, %c0_67, %c0_68] : memref<1x8x8x128xf32, #tpu.memory_space<vmem>>, vector<1x8x8x128xf32>
    %69 = vector.shape_cast %68 : vector<1x8x8x128xf32> to vector<8x8x128xf32>
    %70 = vector.shape_cast %67 : vector<8x8x128xf32> to vector<1x8x8x128xf32>
    tpu.vector_store %arg4[%c0_65, %c0_66, %c0_67, %c0_68], %70 {strides = array<i32>} : memref<1x8x8x128xf32, #tpu.memory_space<vmem>>, vector<1x8x8x128xf32>,
    %c0_i32 = arith.constant 0 : i32
    %71 = arith.cmpi eq, %arg0, %c0_i32 : i32
    %72 = arith.extui %71 : i1 to i32
    %c0_i32_69 = arith.constant 0 : i32
    %73 = arith.cmpi ne, %72, %c0_i32_69 : i32
    scf.if %73 {
      %cst_76 = arith.constant 0.000000e+00 : f32
      %83 = vector.broadcast %cst_76 : f32 to vector<2x128xf32>
      %c0_77 = arith.constant 0 : index
      %c0_78 = arith.constant 0 : index
      %84 = vector.load %arg5[%c0_77, %c0_78] : memref<2x128xf32, #tpu.memory_space<vmem>>, vector<2x128xf32>
      tpu.vector_store %arg5[%c0_77, %c0_78], %83 {strides = array<i32>} : memref<2x128xf32, #tpu.memory_space<vmem>>, vector<2x128xf32>,
    } else {
    }
    %cst_70 = arith.constant dense<0.000000e+00> : vector<128xf32>
    %74 = vector.multi_reduction <add>, %66, %cst_70 [0] : vector<64x128xf32> to vector<128xf32>
    %75 = vector.shape_cast %74 : vector<128xf32> to vector<1x128xf32>
    %76 = arith.mulf %66, %66 : vector<64x128xf32>
    %cst_71 = arith.constant dense<0.000000e+00> : vector<128xf32>
    %77 = vector.multi_reduction <add>, %76, %cst_71 [0] : vector<64x128xf32> to vector<128xf32>
    %78 = vector.shape_cast %77 : vector<128xf32> to vector<1x128xf32>
    %79 = tpu.concatenate %75, %78 in 0 : vector<1x128xf32>, vector<1x128xf32> -> vector<2x128xf32>
    %c0_72 = arith.constant 0 : index
    %c0_73 = arith.constant 0 : index
    %80 = vector.load %arg5[%c0_72, %c0_73] : memref<2x128xf32, #tpu.memory_space<vmem>>, vector<2x128xf32>
    %81 = arith.addf %80, %79 : vector<2x128xf32>
    %c0_74 = arith.constant 0 : index
    %c0_75 = arith.constant 0 : index
    %82 = vector.load %arg5[%c0_74, %c0_75] : memref<2x128xf32, #tpu.memory_space<vmem>>, vector<2x128xf32>
    tpu.vector_store %arg5[%c0_74, %c0_75], %81 {strides = array<i32>} : memref<2x128xf32, #tpu.memory_space<vmem>>, vector<2x128xf32>,
    return
  }
  func.func @transform_0(%arg0: i32) -> (i32, i32, i32, i32) {
    %c0_i32 = arith.constant 0 : i32
    %c0_i32_0 = arith.constant 0 : i32
    %c0_i32_1 = arith.constant 0 : i32
    %c0_i32_2 = arith.constant 0 : i32
    return %arg0, %c0_i32, %c0_i32_0, %c0_i32_1 : i32, i32, i32, i32
  }
  func.func @transform_1(%arg0: i32) -> (i32, i32, i32) {
    %c0_i32 = arith.constant 0 : i32
    %c0_i32_0 = arith.constant 0 : i32
    %c0_i32_1 = arith.constant 0 : i32
    %c0_i32_2 = arith.constant 0 : i32
    return %c0_i32, %c0_i32_0, %c0_i32_1 : i32, i32, i32
  }
  func.func @transform_2(%arg0: i32) -> (i32, i32) {
    %c0_i32 = arith.constant 0 : i32
    %c0_i32_0 = arith.constant 0 : i32
    %c0_i32_1 = arith.constant 0 : i32
    return %c0_i32, %c0_i32_0 : i32, i32
  }
  func.func @transform_3(%arg0: i32) -> (i32, i32, i32, i32) {
    %c0_i32 = arith.constant 0 : i32
    %c0_i32_0 = arith.constant 0 : i32
    %c0_i32_1 = arith.constant 0 : i32
    %c0_i32_2 = arith.constant 0 : i32
    return %arg0, %c0_i32, %c0_i32_0, %c0_i32_1 : i32, i32, i32, i32
  }
  func.func @transform_4(%arg0: i32) -> (i32, i32) {
    %c0_i32 = arith.constant 0 : i32
    %c0_i32_0 = arith.constant 0 : i32
    %c0_i32_1 = arith.constant 0 : i32
    return %c0_i32, %c0_i32_0 : i32, i32
  }
}

module attributes {stable_mosaic.version = 11 : i64} {
  func.func @_bn_prelu_kernel(%arg0: i32, %arg1: memref<1x8x8x128xf32, #tpu.memory_space<vmem>>, %arg2: memref<2x128xf32, #tpu.memory_space<vmem>>, %arg3: memref<1x128xf32, #tpu.memory_space<vmem>>, %arg4: memref<1x128xf32, #tpu.memory_space<vmem>>, %arg5: memref<1x128xf32, #tpu.memory_space<vmem>>, %arg6: memref<1x8x8x128xbf16, #tpu.memory_space<vmem>>) attributes {dimension_semantics = [#tpu.dimension_semantics<parallel>], iteration_bounds = array<i64: 2>, scalar_prefetch = 0 : i64, scratch_operands = 0 : i64, tpu.core_type = #tpu.core_type<tc>, window_params = [{transform_indices = @transform_0, window_bounds = array<i64: 1, 8, 8, 128>}, {pipeline_mode = #tpu.pipeline_mode<synchronous>, transform_indices = @transform_1, window_bounds = array<i64: 2, 128>}, {pipeline_mode = #tpu.pipeline_mode<synchronous>, transform_indices = @transform_2, window_bounds = array<i64: 1, 128>}, {pipeline_mode = #tpu.pipeline_mode<synchronous>, transform_indices = @transform_3, window_bounds = array<i64: 1, 128>}, {pipeline_mode = #tpu.pipeline_mode<synchronous>, transform_indices = @transform_4, window_bounds = array<i64: 1, 128>}, {transform_indices = @transform_5, window_bounds = array<i64: 1, 8, 8, 128>}]} {
    %c0 = arith.constant 0 : index
    %c0_0 = arith.constant 0 : index
    %0 = vector.load %arg2[%c0, %c0_0] : memref<2x128xf32, #tpu.memory_space<vmem>>, vector<1x128xf32>
    %cst = arith.constant 7.812500e-03 : f32
    %1 = vector.broadcast %cst : f32 to vector<1x128xf32>
    %2 = arith.mulf %0, %1 : vector<1x128xf32>
    %c1 = arith.constant 1 : index
    %c0_1 = arith.constant 0 : index
    %3 = vector.load %arg2[%c1, %c0_1] : memref<2x128xf32, #tpu.memory_space<vmem>>, vector<1x128xf32>
    %cst_2 = arith.constant 7.812500e-03 : f32
    %4 = vector.broadcast %cst_2 : f32 to vector<1x128xf32>
    %5 = arith.mulf %3, %4 : vector<1x128xf32>
    %6 = arith.mulf %2, %2 : vector<1x128xf32>
    %7 = arith.subf %5, %6 : vector<1x128xf32>
    %cst_3 = arith.constant 0.000000e+00 : f32
    %8 = vector.broadcast %cst_3 : f32 to vector<1x128xf32>
    %9 = arith.maximumf %7, %8 : vector<1x128xf32>
    %c0_4 = arith.constant 0 : index
    %c0_5 = arith.constant 0 : index
    %10 = vector.load %arg3[%c0_4, %c0_5] : memref<1x128xf32, #tpu.memory_space<vmem>>, vector<1x128xf32>
    %cst_6 = arith.constant 9.99999974E-6 : f32
    %11 = vector.broadcast %cst_6 : f32 to vector<1x128xf32>
    %12 = arith.addf %9, %11 : vector<1x128xf32>
    %13 = math.rsqrt %12 : vector<1x128xf32>
    %14 = arith.mulf %10, %13 : vector<1x128xf32>
    %c0_7 = arith.constant 0 : index
    %c0_8 = arith.constant 0 : index
    %15 = vector.load %arg4[%c0_7, %c0_8] : memref<1x128xf32, #tpu.memory_space<vmem>>, vector<1x128xf32>
    %16 = arith.mulf %2, %14 : vector<1x128xf32>
    %17 = arith.subf %15, %16 : vector<1x128xf32>
    %c0_9 = arith.constant 0 : index
    %c0_10 = arith.constant 0 : index
    %c0_11 = arith.constant 0 : index
    %c0_12 = arith.constant 0 : index
    %18 = vector.load %arg1[%c0_9, %c0_10, %c0_11, %c0_12] : memref<1x8x8x128xf32, #tpu.memory_space<vmem>>, vector<1x8x8x128xf32>
    %19 = vector.shape_cast %18 : vector<1x8x8x128xf32> to vector<8x8x128xf32>
    %20 = vector.shape_cast %14 : vector<1x128xf32> to vector<1x1x128xf32>
    %21 = vector.broadcast %20 : vector<1x1x128xf32> to vector<8x8x128xf32>
    %22 = arith.mulf %19, %21 : vector<8x8x128xf32>
    %23 = vector.shape_cast %17 : vector<1x128xf32> to vector<1x1x128xf32>
    %24 = vector.broadcast %23 : vector<1x1x128xf32> to vector<8x8x128xf32>
    %25 = arith.addf %22, %24 : vector<8x8x128xf32>
    %cst_13 = arith.constant 0.000000e+00 : f32
    %26 = vector.broadcast %cst_13 : f32 to vector<8x8x128xf32>
    %27 = arith.cmpf ogt, %25, %26 : vector<8x8x128xf32>
    %c0_14 = arith.constant 0 : index
    %c0_15 = arith.constant 0 : index
    %28 = vector.load %arg5[%c0_14, %c0_15] : memref<1x128xf32, #tpu.memory_space<vmem>>, vector<1x128xf32>
    %29 = vector.shape_cast %28 : vector<1x128xf32> to vector<1x1x128xf32>
    %30 = vector.broadcast %29 : vector<1x1x128xf32> to vector<8x8x128xf32>
    %31 = arith.mulf %25, %30 : vector<8x8x128xf32>
    %32 = arith.select %27, %25, %31 : vector<8x8x128xi1>, vector<8x8x128xf32>
    %33 = arith.truncf %32 : vector<8x8x128xf32> to vector<8x8x128xbf16>
    %c0_16 = arith.constant 0 : index
    %c0_17 = arith.constant 0 : index
    %c0_18 = arith.constant 0 : index
    %c0_19 = arith.constant 0 : index
    %34 = vector.load %arg6[%c0_16, %c0_17, %c0_18, %c0_19] : memref<1x8x8x128xbf16, #tpu.memory_space<vmem>>, vector<1x8x8x128xbf16>
    %35 = vector.shape_cast %34 : vector<1x8x8x128xbf16> to vector<8x8x128xbf16>
    %36 = vector.shape_cast %33 : vector<8x8x128xbf16> to vector<1x8x8x128xbf16>
    tpu.vector_store %arg6[%c0_16, %c0_17, %c0_18, %c0_19], %36 {strides = array<i32>} : memref<1x8x8x128xbf16, #tpu.memory_space<vmem>>, vector<1x8x8x128xbf16>,
    return
  }
  func.func @transform_0(%arg0: i32) -> (i32, i32, i32, i32) {
    %c0_i32 = arith.constant 0 : i32
    %c0_i32_0 = arith.constant 0 : i32
    %c0_i32_1 = arith.constant 0 : i32
    %c0_i32_2 = arith.constant 0 : i32
    return %arg0, %c0_i32, %c0_i32_0, %c0_i32_1 : i32, i32, i32, i32
  }
  func.func @transform_1(%arg0: i32) -> (i32, i32) {
    %c0_i32 = arith.constant 0 : i32
    %c0_i32_0 = arith.constant 0 : i32
    %c0_i32_1 = arith.constant 0 : i32
    return %c0_i32, %c0_i32_0 : i32, i32
  }
  func.func @transform_2(%arg0: i32) -> (i32, i32) {
    %c0_i32 = arith.constant 0 : i32
    %c0_i32_0 = arith.constant 0 : i32
    %c0_i32_1 = arith.constant 0 : i32
    return %c0_i32, %c0_i32_0 : i32, i32
  }
  func.func @transform_3(%arg0: i32) -> (i32, i32) {
    %c0_i32 = arith.constant 0 : i32
    %c0_i32_0 = arith.constant 0 : i32
    %c0_i32_1 = arith.constant 0 : i32
    return %c0_i32, %c0_i32_0 : i32, i32
  }
  func.func @transform_4(%arg0: i32) -> (i32, i32) {
    %c0_i32 = arith.constant 0 : i32
    %c0_i32_0 = arith.constant 0 : i32
    %c0_i32_1 = arith.constant 0 : i32
    return %c0_i32, %c0_i32_0 : i32, i32
  }
  func.func @transform_5(%arg0: i32) -> (i32, i32, i32, i32) {
    %c0_i32 = arith.constant 0 : i32
    %c0_i32_0 = arith.constant 0 : i32
    %c0_i32_1 = arith.constant 0 : i32
    %c0_i32_2 = arith.constant 0 : i32
    return %arg0, %c0_i32, %c0_i32_0, %c0_i32_1 : i32, i32, i32, i32
  }
}

module attributes {stable_mosaic.version = 11 : i64} {
  func.func @_bn_prelu_kernel(%arg0: i32, %arg1: memref<1x8x8x128xf32, #tpu.memory_space<vmem>>, %arg2: memref<2x128xf32, #tpu.memory_space<vmem>>, %arg3: memref<1x128xf32, #tpu.memory_space<vmem>>, %arg4: memref<1x128xf32, #tpu.memory_space<vmem>>, %arg5: memref<1x128xf32, #tpu.memory_space<vmem>>, %arg6: memref<1x10x10x128xbf16, #tpu.memory_space<vmem>>) attributes {dimension_semantics = [#tpu.dimension_semantics<parallel>], iteration_bounds = array<i64: 2>, scalar_prefetch = 0 : i64, scratch_operands = 0 : i64, tpu.core_type = #tpu.core_type<tc>, window_params = [{transform_indices = @transform_0, window_bounds = array<i64: 1, 8, 8, 128>}, {pipeline_mode = #tpu.pipeline_mode<synchronous>, transform_indices = @transform_1, window_bounds = array<i64: 2, 128>}, {pipeline_mode = #tpu.pipeline_mode<synchronous>, transform_indices = @transform_2, window_bounds = array<i64: 1, 128>}, {pipeline_mode = #tpu.pipeline_mode<synchronous>, transform_indices = @transform_3, window_bounds = array<i64: 1, 128>}, {pipeline_mode = #tpu.pipeline_mode<synchronous>, transform_indices = @transform_4, window_bounds = array<i64: 1, 128>}, {transform_indices = @transform_5, window_bounds = array<i64: 1, 10, 10, 128>}]} {
    %c0 = arith.constant 0 : index
    %c0_0 = arith.constant 0 : index
    %0 = vector.load %arg2[%c0, %c0_0] : memref<2x128xf32, #tpu.memory_space<vmem>>, vector<1x128xf32>
    %cst = arith.constant 7.812500e-03 : f32
    %1 = vector.broadcast %cst : f32 to vector<1x128xf32>
    %2 = arith.mulf %0, %1 : vector<1x128xf32>
    %c1 = arith.constant 1 : index
    %c0_1 = arith.constant 0 : index
    %3 = vector.load %arg2[%c1, %c0_1] : memref<2x128xf32, #tpu.memory_space<vmem>>, vector<1x128xf32>
    %cst_2 = arith.constant 7.812500e-03 : f32
    %4 = vector.broadcast %cst_2 : f32 to vector<1x128xf32>
    %5 = arith.mulf %3, %4 : vector<1x128xf32>
    %6 = arith.mulf %2, %2 : vector<1x128xf32>
    %7 = arith.subf %5, %6 : vector<1x128xf32>
    %cst_3 = arith.constant 0.000000e+00 : f32
    %8 = vector.broadcast %cst_3 : f32 to vector<1x128xf32>
    %9 = arith.maximumf %7, %8 : vector<1x128xf32>
    %c0_4 = arith.constant 0 : index
    %c0_5 = arith.constant 0 : index
    %10 = vector.load %arg3[%c0_4, %c0_5] : memref<1x128xf32, #tpu.memory_space<vmem>>, vector<1x128xf32>
    %cst_6 = arith.constant 9.99999974E-6 : f32
    %11 = vector.broadcast %cst_6 : f32 to vector<1x128xf32>
    %12 = arith.addf %9, %11 : vector<1x128xf32>
    %13 = math.rsqrt %12 : vector<1x128xf32>
    %14 = arith.mulf %10, %13 : vector<1x128xf32>
    %c0_7 = arith.constant 0 : index
    %c0_8 = arith.constant 0 : index
    %15 = vector.load %arg4[%c0_7, %c0_8] : memref<1x128xf32, #tpu.memory_space<vmem>>, vector<1x128xf32>
    %16 = arith.mulf %2, %14 : vector<1x128xf32>
    %17 = arith.subf %15, %16 : vector<1x128xf32>
    %c0_9 = arith.constant 0 : index
    %c0_10 = arith.constant 0 : index
    %c0_11 = arith.constant 0 : index
    %c0_12 = arith.constant 0 : index
    %18 = vector.load %arg1[%c0_9, %c0_10, %c0_11, %c0_12] : memref<1x8x8x128xf32, #tpu.memory_space<vmem>>, vector<1x8x8x128xf32>
    %19 = vector.shape_cast %18 : vector<1x8x8x128xf32> to vector<8x8x128xf32>
    %20 = vector.shape_cast %14 : vector<1x128xf32> to vector<1x1x128xf32>
    %21 = vector.broadcast %20 : vector<1x1x128xf32> to vector<8x8x128xf32>
    %22 = arith.mulf %19, %21 : vector<8x8x128xf32>
    %23 = vector.shape_cast %17 : vector<1x128xf32> to vector<1x1x128xf32>
    %24 = vector.broadcast %23 : vector<1x1x128xf32> to vector<8x8x128xf32>
    %25 = arith.addf %22, %24 : vector<8x8x128xf32>
    %cst_13 = arith.constant 0.000000e+00 : f32
    %26 = vector.broadcast %cst_13 : f32 to vector<8x8x128xf32>
    %27 = arith.cmpf ogt, %25, %26 : vector<8x8x128xf32>
    %c0_14 = arith.constant 0 : index
    %c0_15 = arith.constant 0 : index
    %28 = vector.load %arg5[%c0_14, %c0_15] : memref<1x128xf32, #tpu.memory_space<vmem>>, vector<1x128xf32>
    %29 = vector.shape_cast %28 : vector<1x128xf32> to vector<1x1x128xf32>
    %30 = vector.broadcast %29 : vector<1x1x128xf32> to vector<8x8x128xf32>
    %31 = arith.mulf %25, %30 : vector<8x8x128xf32>
    %32 = arith.select %27, %25, %31 : vector<8x8x128xi1>, vector<8x8x128xf32>
    %cst_16 = arith.constant 0.000000e+00 : bf16
    %33 = vector.broadcast %cst_16 : bf16 to vector<10x10x128xbf16>
    %c0_17 = arith.constant 0 : index
    %c0_18 = arith.constant 0 : index
    %c0_19 = arith.constant 0 : index
    %c0_20 = arith.constant 0 : index
    %34 = vector.load %arg6[%c0_17, %c0_18, %c0_19, %c0_20] : memref<1x10x10x128xbf16, #tpu.memory_space<vmem>>, vector<1x10x10x128xbf16>
    %35 = vector.shape_cast %34 : vector<1x10x10x128xbf16> to vector<10x10x128xbf16>
    %36 = vector.shape_cast %33 : vector<10x10x128xbf16> to vector<1x10x10x128xbf16>
    tpu.vector_store %arg6[%c0_17, %c0_18, %c0_19, %c0_20], %36 {strides = array<i32>} : memref<1x10x10x128xbf16, #tpu.memory_space<vmem>>, vector<1x10x10x128xbf16>,
    %37 = arith.truncf %32 : vector<8x8x128xf32> to vector<8x8x128xbf16>
    %c0_21 = arith.constant 0 : index
    %c1_22 = arith.constant 1 : index
    %c1_23 = arith.constant 1 : index
    %c0_24 = arith.constant 0 : index
    %38 = vector.load %arg6[%c0_21, %c1_22, %c1_23, %c0_24] : memref<1x10x10x128xbf16, #tpu.memory_space<vmem>>, vector<1x8x8x128xbf16>
    %39 = vector.shape_cast %38 : vector<1x8x8x128xbf16> to vector<8x8x128xbf16>
    %40 = vector.shape_cast %37 : vector<8x8x128xbf16> to vector<1x8x8x128xbf16>
    tpu.vector_store %arg6[%c0_21, %c1_22, %c1_23, %c0_24], %40 {strides = array<i32>} : memref<1x10x10x128xbf16, #tpu.memory_space<vmem>>, vector<1x8x8x128xbf16>,
    return
  }
  func.func @transform_0(%arg0: i32) -> (i32, i32, i32, i32) {
    %c0_i32 = arith.constant 0 : i32
    %c0_i32_0 = arith.constant 0 : i32
    %c0_i32_1 = arith.constant 0 : i32
    %c0_i32_2 = arith.constant 0 : i32
    return %arg0, %c0_i32, %c0_i32_0, %c0_i32_1 : i32, i32, i32, i32
  }
  func.func @transform_1(%arg0: i32) -> (i32, i32) {
    %c0_i32 = arith.constant 0 : i32
    %c0_i32_0 = arith.constant 0 : i32
    %c0_i32_1 = arith.constant 0 : i32
    return %c0_i32, %c0_i32_0 : i32, i32
  }
  func.func @transform_2(%arg0: i32) -> (i32, i32) {
    %c0_i32 = arith.constant 0 : i32
    %c0_i32_0 = arith.constant 0 : i32
    %c0_i32_1 = arith.constant 0 : i32
    return %c0_i32, %c0_i32_0 : i32, i32
  }
  func.func @transform_3(%arg0: i32) -> (i32, i32) {
    %c0_i32 = arith.constant 0 : i32
    %c0_i32_0 = arith.constant 0 : i32
    %c0_i32_1 = arith.constant 0 : i32
    return %c0_i32, %c0_i32_0 : i32, i32
  }
  func.func @transform_4(%arg0: i32) -> (i32, i32) {
    %c0_i32 = arith.constant 0 : i32
    %c0_i32_0 = arith.constant 0 : i32
    %c0_i32_1 = arith.constant 0 : i32
    return %c0_i32, %c0_i32_0 : i32, i32
  }
  func.func @transform_5(%arg0: i32) -> (i32, i32, i32, i32) {
    %c0_i32 = arith.constant 0 : i32
    %c0_i32_0 = arith.constant 0 : i32
    %c0_i32_1 = arith.constant 0 : i32
    %c0_i32_2 = arith.constant 0 : i32
    return %arg0, %c0_i32, %c0_i32_0, %c0_i32_1 : i32, i32, i32, i32
  }
}

</mosaic_0001>

<bundles_post_ra>
// kernel: vnet_down_block_forward.9
= control target key start
LH: loop header
LB: loop body
LE: loop exit
PB: predicated region body
PF: predicated region fallthrough
CT: control target
= control target key end

     0   :  { %s462_s18 = smov 0   ;;  %s498_s0 = inlined_call_operand.vmem [shape: f32[2,8,8,128], index: 0, kind: input, shape index: {}]   ;;  %s499_s1 = inlined_call_operand.vmem [shape: f32[2,128], index: 1, kind: input, shape index: {}]   ;;  %s500_s2 = inlined_call_operand.vmem [shape: f32[1,128], index: 2, kind: input, shape index: {}]   ;;  %s501_s3 = inlined_call_operand.vmem [shape: f32[1,128], index: 3, kind: input, shape index: {}]   ;;  %s502_s4 = inlined_call_operand.vmem [shape: f32[1,128], index: 4, kind: input, shape index: {}]   ;;  %s503_s5 = inlined_call_operand.vmem [shape: bf16[2,8,8,128], index: 5, kind: output, shape index: {}]  }
   0x1 LB: > { %s377_s19 = sadd.s32 4294967295, %s430_s18   ;;  %p381_p0 = scmp.ge.s32.totalorder %s430_s18, 1  ;;  %s430_s18 = sphi %s462_s18, %s15_s18  }
   0x2   : > { %p187_p1 = scmp.lt.s32.totalorder %s430_s18, 3 }
   0x4   : > { %p188_p2 = pnand %p381_p0, %p187_p1 }
   0x5   : > { %v225_v0 = vld [vmem:[%s499_s1] sm:$0x1] (!%p188_p2)  ;;  %v227_v1 = vld [vmem:[%s499_s1 + $0x1] sm:$0x1] (!%p188_p2)  ;;  %p215_p3 = scmp.lt.s32.totalorder (!%p188_p2), %s377_s19, 1  ;;  %v248_v8 = vlaneseq (!%p188_p2) }
   0x6   : > { %191 = sbr.rel (%p188_p2) target bundleno = 48 (0x30), region = 40  ;;  %v226_v2 = vmul.f32 (!%p188_p2), 0.0078125, %v225_v0  ;;  %v228_v3 = vmul.f32 (!%p188_p2), 0.0078125, %v227_v1  ;;  %v232_v10 = vld [vmem:[%s500_s2] sm:$0x1] (!%p188_p2) }
   0x7   : > { %v249_v9 = vshrl.u32 (!%p188_p2), %v248_v8, 7  ;;  %v236_v14 = vld [vmem:[%s501_s3] sm:$0x1] (!%p188_p2) }
   0x8   : > { %v229_v4 = vmul.f32 (!%p188_p2), %v226_v2, %v226_v2  ;;  %v386_v35 = vld [vmem:[%s502_s4] ss:$0 sm:$0xff] (!%p188_p2) }
   0x9   : > { %v250_v11 = vsub.s32 (!%p188_p2), 0, %v249_v9 }
   0xa   : > { %v230_v5 = vsub.f32 (!%p188_p2), %v228_v3, %v229_v4 }
   0xc   : > { %v231_v6 = vmax.f32 (!%p188_p2), %v230_v5, 0.0 }
   0xd   : > { %s505_s19 = smov (!%p215_p3, %s377_s19), 1 }
   0xe   : > { %v233_v7 = vadd.f32 1e-05, %v231_v6  ;;  %s389_s24 = sshll.u32 %s505_s19, 6  ;;  %s390_s9 = sshll.u32 %s505_s19, 5 }
   0xf   : > { %s219_s27 = scalar_lea.vmem %s498_s0, %s389_s24  ;;  %s224_s12 = scalar_lea.vmem %s503_s5, %s390_s9 }
  0x10   : > { %422 = vrsqrt.f32 %v233_v7  ;;  %v239_v15 = vld [vmem:[%s219_s27] sm:$0xff]  ;;  %v240_v16 = vld [vmem:[%s219_s27 + $0x8] sm:$0xff]  ;;  %v241_v17 = vld [vmem:[%s219_s27 + $0x10] sm:$0xff] }
  0x11   : > { %v242_v18 = vld [vmem:[%s219_s27 + $0x18] sm:$0xff]  ;;  %v243_v21 = vld [vmem:[%s219_s27 + $0x20] sm:$0xff]  ;;  %v244_v22 = vld [vmem:[%s219_s27 + $0x28] sm:$0xff] }
  0x12   : > { %v245_v23 = vld [vmem:[%s219_s27 + $0x30] sm:$0xff]  ;;  %v246_v24 = vld [vmem:[%s219_s27 + $0x38] sm:$0xff] }
  0x1a   : > { %v423_v12 = vpop.eup %422 }
  0x1b   : > { %v235_v13 = vmul.f32 %v423_v12, %v232_v10 }
  0x1d   : > { %v237_v19 = vmul.f32 %v235_v13, %v226_v2  ;;  %v251_v20 = vrot.slane %v235_v13, %v250_v11 }
  0x1f   : > { %v238_v25 = vsub.f32 %v236_v14, %v237_v19  ;;  %v253_v26 = vmul.f32 %v251_v20, %v239_v15  ;;  %v254_v27 = vmul.f32 %v251_v20, %v240_v16  ;;  %v255_v28 = vmul.f32 %v251_v20, %v241_v17 }
  0x20   : > { %v256_v29 = vmul.f32 %v251_v20, %v242_v18  ;;  %v257_v30 = vmul.f32 %v251_v20, %v243_v21  ;;  %v258_v31 = vmul.f32 %v251_v20, %v244_v22  ;;  %v259_v32 = vmul.f32 %v251_v20, %v245_v23 }
  0x21   : > { %v265_v33 = vrot.slane %v238_v25, %v250_v11  ;;  %v260_v34 = vmul.f32 %v251_v20, %v246_v24 }
  0x23   : > { %v267_v36 = vadd.f32 %v265_v33, %v253_v26  ;;  %v268_v37 = vadd.f32 %v265_v33, %v254_v27  ;;  %v269_v38 = vadd.f32 %v265_v33, %v255_v28  ;;  %v270_v39 = vadd.f32 %v265_v33, %v256_v29 }
  0x24   : > { %v271_v40 = vadd.f32 %v265_v33, %v257_v30  ;;  %v272_v41 = vadd.f32 %v265_v33, %v258_v31  ;;  %v273_v42 = vadd.f32 %v265_v33, %v259_v32  ;;  %v274_v43 = vadd.f32 %v265_v33, %v260_v34 }
  0x25   : > { %vm275_vm0 = vcmp.gt.f32.partialorder %v267_v36, 0.0  ;;  %vm276_vm1 = vcmp.gt.f32.partialorder %v268_v37, 0.0  ;;  %v290_v44 = vmul.f32 %v386_v35, %v267_v36  ;;  %v291_v45 = vmul.f32 %v386_v35, %v268_v37 }
  0x26   : > { %vm277_vm2 = vcmp.gt.f32.partialorder %v269_v38, 0.0  ;;  %vm278_vm3 = vcmp.gt.f32.partialorder %v270_v39, 0.0  ;;  %v292_v46 = vmul.f32 %v386_v35, %v269_v38  ;;  %v293_v47 = vmul.f32 %v386_v35, %v270_v39 }
  0x27   : > { %v298_v48 = vsel %vm275_vm0, %v267_v36, %v290_v44  ;;  %v299_v49 = vsel %vm276_vm1, %v268_v37, %v291_v45  ;;  %vm279_vm4 = vcmp.gt.f32.partialorder %v271_v40, 0.0  ;;  %vm280_vm5 = vcmp.gt.f32.partialorder %v272_v41, 0.0 }
  0x28   : > { %v394_v50 = vpack.c.bf16 %v299_v49, %v298_v48  ;;  %v300_v51 = vsel %vm277_vm2, %v269_v38, %v292_v46  ;;  %v301_v52 = vsel %vm278_vm3, %v270_v39, %v293_v47  ;;  %v294_v53 = vmul.f32 %v386_v35, %v271_v40 }
  0x29   : > { %v399_v54 = vpack.c.bf16 %v301_v52, %v300_v51  ;;  %v295_v55 = vmul.f32 %v386_v35, %v272_v41  ;;  %vm281_vm6 = vcmp.gt.f32.partialorder %v273_v42, 0.0  ;;  %vm282_vm7 = vcmp.gt.f32.partialorder %v274_v43, 0.0 }
  0x2a   : > { %395 = vst [vmem:[%s224_s12] sm:$0xff] %v394_v50   ;;  %v302_v56 = vsel %vm279_vm4, %v271_v40, %v294_v53  ;;  %v296_v57 = vmul.f32 %v386_v35, %v273_v42  ;;  %v297_v58 = vmul.f32 %v386_v35, %v274_v43 }
  0x2b   : > { %411 = vst [vmem:[%s224_s12 + $0x8] sm:$0xff] %v399_v54   ;;  %v303_v59 = vsel %vm280_vm5, %v272_v41, %v295_v55 }
  0x2c   : > { %v404_v60 = vpack.c.bf16 %v303_v59, %v302_v56  ;;  %v304_v61 = vsel %vm281_vm6, %v273_v42, %v296_v57  ;;  %v305_v62 = vsel %vm282_vm7, %v274_v43, %v297_v58 }
  0x2d   : > { %v409_v63 = vpack.c.bf16 %v305_v62, %v304_v61 }
  0x2e   : > { %412 = vst [vmem:[%s224_s12 + $0x10] sm:$0xff] %v404_v60  }
  0x2f   : > { %413 = vst [vmem:[%s224_s12 + $0x18] sm:$0xff] %v409_v63  }
  0x30 PF: > { %s15_s18 = sadd.s32 1, %s430_s18  }
  0x31   : > { %p12_p4 = scmp.ge.s32.totalorder %s15_s18, 4  }
  0x33   :  { %14 = sbr.rel (!%p12_p4) target bundleno = 1 (0x1), region = 70 }

// kernel: vnet_down_block_forward.5
= control target key start
LH: loop header
LB: loop body
LE: loop exit
PB: predicated region body
PF: predicated region fallthrough
CT: control target
= control target key end

     0   :  { %s465_s6 = smov 0   ;;  %s598_s0 = inlined_call_operand.vmem [shape: bf16[2,8,2,8,256], index: 0, kind: input, shape index: {}]   ;;  %s599_s1 = inlined_call_operand.vmem [shape: bf16[2,10,10,128], index: 1, kind: output, shape index: {}]  }
   0x1 LB: > { %s385_s7 = sadd.s32 4294967295, %s452_s6   ;;  %p389_p0 = scmp.ge.s32.totalorder %s452_s6, 1  ;;  %s452_s6 = sphi %s465_s6, %s11_s6  }
   0x2   : > { %p87_p1 = scmp.lt.s32.totalorder %s452_s6, 3 }
   0x4   : > { %p88_p2 = pnand %p389_p0, %p87_p1 }
   0x5   : > { %p107_p3 = scmp.lt.s32.totalorder (!%p88_p2), %s385_s7, 1  ;;  %v454_v3 = vmov (!%p88_p2), 0   ;;  %vm277_vm0 = vsmask.f32 (!%p88_p2), 7938  ;;  %vm276_vm1 = vcmask (!%p88_p2), 1043456   ;;  %vm282_vm2 = vcmask (!%p88_p2), 1040384  }
   0x6   : > { %91 = sbr.rel (%p88_p2) target bundleno = 50 (0x32), region = 24  ;;  %vm283_vm3 = vsmask.f32 (!%p88_p2), 256  ;;  %vm521_vm4 = vmand (!%p88_p2), %vm276_vm1, %vm277_vm0 }
   0x7   : > { %vm529_vm5 = vmand (!%p88_p2), %vm282_vm2, %vm283_vm3 }
   0xd   : > { %s605_s7 = smov (!%p107_p3, %s385_s7), 1 }
   0xe   : > { %s436_s8 = smul.u32 80, %s605_s7  ;;  %s435_s9 = sshll.u32 %s605_s7, 7 }
   0xf   : > { %s476_s12 = scalar_lea.vmem %s598_s0, %s435_s9 }
  0x10   : > { %s481_s15 = scalar_lea.vmem %s599_s1, %s436_s8  ;;  %v118_v0 = vld [vmem:[%s476_s12] sm:$0xff]  ;;  %v393_v1 = vld [vmem:[%s476_s12 + $0x8] sm:$0xff]  ;;  %v119_v2 = vld [vmem:[%s476_s12 + $0x10] sm:$0xff] }
  0x11   : > { %177 = vst [vmem:[%s481_s15 + $0x8] sm:$0xf] %v454_v3  ;;  %175 = vst [vmem:[%s481_s15] sm:$0xf] %v454_v3  ;;  %v135_v4 = vmax.bf16 %v393_v1, %v118_v0  ;;  %v394_v5 = vld [vmem:[%s476_s12 + $0x18] sm:$0xff]  ;;  %v120_v6 = vld [vmem:[%s476_s12 + $0x20] sm:$0xff] }
  0x12   : > { %176 = vst [vmem:[%s481_s15 + $0x4] sm:$0x1] %v454_v3  ;;  %178 = vst [vmem:[%s481_s15 + $0xc] sm:$0x1] %v454_v3  ;;  %v395_v7 = vld [vmem:[%s476_s12 + $0x28] sm:$0xff]  ;;  %v136_v8 = vmax.bf16 %v394_v5, %v119_v2  ;;  %v121_v10 = vld [vmem:[%s476_s12 + $0x30] sm:$0xff] }
  0x13   : > { %179 = vst [vmem:[%s481_s15 + $0x10] sm:$0xf] %v454_v3  ;;  %180 = vst [vmem:[%s481_s15 + $0x14] sm:$0x1] %v454_v3  ;;  %v137_v9 = vmax.bf16 %v395_v7, %v120_v6  ;;  %v396_v11 = vld [vmem:[%s476_s12 + $0x38] sm:$0xff]  ;;  %v122_v12 = vld [vmem:[%s476_s12 + $0x40] sm:$0xff] }
  0x14   : > { %181 = vst [vmem:[%s481_s15 + $0x18] sm:$0xf] %v454_v3  ;;  %182 = vst [vmem:[%s481_s15 + $0x1c] sm:$0x1] %v454_v3  ;;  %v151_v13 = vrot.slane %v135_v4, 4  ;;  %v138_v14 = vmax.bf16 %v396_v11, %v121_v10  ;;  %v397_v15 = vld [vmem:[%s476_s12 + $0x48] sm:$0xff] }
  0x15   : > { %183 = vst [vmem:[%s481_s15 + $0x20] sm:$0xf] %v454_v3  ;;  %184 = vst [vmem:[%s481_s15 + $0x24] sm:$0x1] %v454_v3  ;;  %v123_v16 = vld [vmem:[%s476_s12 + $0x50] sm:$0xff]  ;;  %v398_v17 = vld [vmem:[%s476_s12 + $0x58] sm:$0xff]  ;;  %v139_v20 = vmax.bf16 %v397_v15, %v122_v12 }
  0x16   : > { %185 = vst [vmem:[%s481_s15 + $0x28] sm:$0xf] %v454_v3  ;;  %186 = vst [vmem:[%s481_s15 + $0x2c] sm:$0x1] %v454_v3  ;;  %v152_v18 = vrot.slane %v136_v8, 4  ;;  %v153_v19 = vrot.slane %v137_v9, 4  ;;  %v140_v21 = vmax.bf16 %v398_v17, %v123_v16  ;;  %v167_v24 = vmax.bf16 %v151_v13, %v135_v4 }
  0x17   : > { %187 = vst [vmem:[%s481_s15 + $0x30] sm:$0xf] %v454_v3  ;;  %188 = vst [vmem:[%s481_s15 + $0x34] sm:$0x1] %v454_v3  ;;  %v124_v22 = vld [vmem:[%s476_s12 + $0x60] sm:$0xff]  ;;  %v399_v23 = vld [vmem:[%s476_s12 + $0x68] sm:$0xff] }
  0x18   : > { %189 = vst [vmem:[%s481_s15 + $0x38] sm:$0xf] %v454_v3  ;;  %190 = vst [vmem:[%s481_s15 + $0x3c] sm:$0x1] %v454_v3  ;;  %v154_v25 = vrot.slane %v138_v14, 4  ;;  %v141_v26 = vmax.bf16 %v399_v23, %v124_v22  ;;  %v168_v27 = vmax.bf16 %v152_v18, %v136_v8  ;;  %v169_v28 = vmax.bf16 %v153_v19, %v137_v9  ;;  %v125_v35 = vld [vmem:[%s476_s12 + $0x70] sm:$0xff] }
  0x19   : > { %191 = vst [vmem:[%s481_s15 + $0x40] sm:$0xf] %v454_v3  ;;  %192 = vst [vmem:[%s481_s15 + $0x44] sm:$0x1] %v454_v3  ;;  %v155_v29 = vrot.slane %v139_v20, 4  ;;  %v156_v30 = vrot.slane %v140_v21, 4 }
  0x1a   : > { %193 = vst [vmem:[%s481_s15 + $0x48] sm:$0xf] %v454_v3  ;;  %194 = vst [vmem:[%s481_s15 + $0x4c] sm:$0x1] %v454_v3  ;;  %v196_v31 = vshrl.u32 %v167_v24, 16  ;;  %v199_v32 = vshll.u32 %v167_v24, 16  ;;  %v170_v33 = vmax.bf16 %v154_v25, %v138_v14 }
  0x1b   : > { %v157_v34 = vrot.slane %v141_v26, 4  ;;  %v400_v36 = vld [vmem:[%s476_s12 + $0x78] sm:$0xff]  ;;  %v204_v37 = vshrl.u32 %v168_v27, 16  ;;  %v207_v38 = vshll.u32 %v168_v27, 16  ;;  %v171_v39 = vmax.bf16 %v155_v29, %v139_v20  ;;  %v401_v42 = vld [vmem:[%s481_s15 + $0x8] sm:$0xf] }
  0x1c   : > { %v198_v40 = vrot.slane %v196_v31, 7  ;;  %v403_v43 = vld [vmem:[%s481_s15 + $0xc] sm:$0x1]  ;;  %v212_v44 = vshrl.u32 %v169_v28, 16  ;;  %v172_v45 = vmax.bf16 %v156_v30, %v140_v21  ;;  %v405_v48 = vld [vmem:[%s481_s15 + $0x10] sm:$0xf]  ;;  %v142_v52 = vmax.bf16 %v400_v36, %v125_v35 }
  0x1d   : > { %v206_v47 = vrot.slane %v204_v37, 7  ;;  %v407_v49 = vld [vmem:[%s481_s15 + $0x14] sm:$0x1]  ;;  %v215_v50 = vshll.u32 %v169_v28, 16  ;;  %v173_v51 = vmax.bf16 %v157_v34, %v141_v26  ;;  %v409_v56 = vld [vmem:[%s481_s15 + $0x18] sm:$0xf] }
  0x1e   : > { %v201_v53 = vor.u32 %v199_v32, %v198_v40  ;;  %v202_v54 = vrot.slane %v198_v40, 4  ;;  %v214_v55 = vrot.slane %v212_v44, 7  ;;  %v220_v57 = vshrl.u32 %v170_v33, 16  ;;  %v411_v60 = vld [vmem:[%s481_s15 + $0x1c] sm:$0x1] }
  0x1f   : > { %v209_v58 = vor.u32 %v207_v38, %v206_v47  ;;  %v210_v59 = vrot.slane %v206_v47, 4  ;;  %v223_v61 = vshll.u32 %v170_v33, 16  ;;  %v228_v62 = vshrl.u32 %v171_v39, 16  ;;  %v413_v6 = vld [vmem:[%s481_s15 + $0x20] sm:$0xf] }
  0x20   : > { %v280_v63 = vsel %vm521_vm4, %v201_v53, %v401_v42  ;;  %v286_v0 = vsel %vm529_vm5, %v202_v54, %v403_v43  ;;  %v217_v1 = vor.u32 %v215_v50, %v214_v55  ;;  %v218_v2 = vrot.slane %v214_v55, 4  ;;  %v415_v10 = vld [vmem:[%s481_s15 + $0x24] sm:$0x1]  ;;  %v419_v12 = vld [vmem:[%s481_s15 + $0x2c] sm:$0x1] }
  0x21   : > { %402 = vst [vmem:[%s481_s15 + $0x8] sm:$0xf] %v280_v63  ;;  %404 = vst [vmem:[%s481_s15 + $0xc] sm:$0x1] %v286_v0  ;;  %v289_v3 = vsel %vm521_vm4, %v209_v58, %v405_v48  ;;  %v292_v4 = vsel %vm529_vm5, %v210_v59, %v407_v49  ;;  %v222_v5 = vrot.slane %v220_v57, 7  ;;  %v230_v7 = vrot.slane %v228_v62, 7 }
  0x22   : > { %406 = vst [vmem:[%s481_s15 + $0x10] sm:$0xf] %v289_v3  ;;  %408 = vst [vmem:[%s481_s15 + $0x14] sm:$0x1] %v292_v4  ;;  %v295_v8 = vsel %vm521_vm4, %v217_v1, %v409_v56  ;;  %v298_v9 = vsel %vm529_vm5, %v218_v2, %v411_v60  ;;  %v231_v11 = vshll.u32 %v171_v39, 16  ;;  %v236_v13 = vshrl.u32 %v172_v45, 16 }
  0x23   : > { %410 = vst [vmem:[%s481_s15 + $0x18] sm:$0xf] %v295_v8  ;;  %412 = vst [vmem:[%s481_s15 + $0x1c] sm:$0x1] %v298_v9  ;;  %v225_v14 = vor.u32 %v223_v61, %v222_v5  ;;  %v226_v15 = vrot.slane %v222_v5, 4  ;;  %v234_v17 = vrot.slane %v230_v7, 4 }
  0x24   : > { %v417_v16 = vld [vmem:[%s481_s15 + $0x28] sm:$0xf]  ;;  %v239_v18 = vshll.u32 %v172_v45, 16  ;;  %v233_v19 = vor.u32 %v231_v11, %v230_v7  ;;  %v238_v20 = vrot.slane %v236_v13, 7  ;;  %v244_v21 = vshrl.u32 %v173_v51, 16 }
  0x25   : > { %v247_v22 = vshll.u32 %v173_v51, 16  ;;  %v301_v23 = vsel %vm521_vm4, %v225_v14, %v413_v6  ;;  %v304_v24 = vsel %vm529_vm5, %v226_v15, %v415_v10  ;;  %v310_v25 = vsel %vm529_vm5, %v234_v17, %v419_v12  ;;  %v421_v26 = vld [vmem:[%s481_s15 + $0x30] sm:$0xf]  ;;  %v423_v27 = vld [vmem:[%s481_s15 + $0x34] sm:$0x1] }
  0x26   : > { %v158_v28 = vrot.slane %v142_v52, 4  ;;  %414 = vst [vmem:[%s481_s15 + $0x20] sm:$0xf] %v301_v23  ;;  %416 = vst [vmem:[%s481_s15 + $0x24] sm:$0x1] %v304_v24  ;;  %v307_v29 = vsel %vm521_vm4, %v233_v19, %v417_v16  ;;  %v241_v30 = vor.u32 %v239_v18, %v238_v20  ;;  %v242_v31 = vrot.slane %v238_v20, 4 }
  0x27   : > { %420 = vst [vmem:[%s481_s15 + $0x2c] sm:$0x1] %v310_v25  ;;  %v246_v32 = vrot.slane %v244_v21, 7  ;;  %418 = vst [vmem:[%s481_s15 + $0x28] sm:$0xf] %v307_v29 }
  0x28   : > { %v425_v33 = vld [vmem:[%s481_s15 + $0x38] sm:$0xf]  ;;  %v427_v34 = vld [vmem:[%s481_s15 + $0x3c] sm:$0x1]  ;;  %v174_v35 = vmax.bf16 %v158_v28, %v142_v52  ;;  %v313_v36 = vsel %vm521_vm4, %v241_v30, %v421_v26  ;;  %v316_v37 = vsel %vm529_vm5, %v242_v31, %v423_v27  ;;  %v429_v47 = vld [vmem:[%s481_s15 + $0x40] sm:$0xf] }
  0x29   : > { %v249_v38 = vor.u32 %v247_v22, %v246_v32  ;;  %v250_v39 = vrot.slane %v246_v32, 4  ;;  %422 = vst [vmem:[%s481_s15 + $0x30] sm:$0xf] %v313_v36  ;;  %424 = vst [vmem:[%s481_s15 + $0x34] sm:$0x1] %v316_v37 }
  0x2a   : > { %v252_v40 = vshrl.u32 %v174_v35, 16  ;;  %v255_v42 = vshll.u32 %v174_v35, 16  ;;  %v431_v48 = vld [vmem:[%s481_s15 + $0x44] sm:$0x1] }
  0x2b   : > { %v319_v43 = vsel %vm521_vm4, %v249_v38, %v425_v33  ;;  %v322_v44 = vsel %vm529_vm5, %v250_v39, %v427_v34 }
  0x2c   : > { %426 = vst [vmem:[%s481_s15 + $0x38] sm:$0xf] %v319_v43  ;;  %428 = vst [vmem:[%s481_s15 + $0x3c] sm:$0x1] %v322_v44  ;;  %v254_v45 = vrot.slane %v252_v40, 7 }
  0x2e   : > { %v257_v49 = vor.u32 %v255_v42, %v254_v45  ;;  %v258_v50 = vrot.slane %v254_v45, 4 }
  0x30   : > { %v325_v51 = vsel %vm521_vm4, %v257_v49, %v429_v47  ;;  %v328_v52 = vsel %vm529_vm5, %v258_v50, %v431_v48 }
  0x31   : > { %430 = vst [vmem:[%s481_s15 + $0x40] sm:$0xf] %v325_v51  ;;  %432 = vst [vmem:[%s481_s15 + $0x44] sm:$0x1] %v328_v52 }
  0x32 PF: > { %s11_s6 = sadd.s32 1, %s452_s6  }
  0x33   : > { %p8_p4 = scmp.ge.s32.totalorder %s11_s6, 4  }
  0x35   :  { %10 = sbr.rel (!%p8_p4) target bundleno = 1 (0x1), region = 56 }

// kernel: vnet_down_block_forward.7
= control target key start
LH: loop header
LB: loop body
LE: loop exit
PB: predicated region body
PF: predicated region fallthrough
CT: control target
= control target key end

     0   :  { %s660_s18 = smov 0   ;;  %s823_s0 = inlined_call_operand.vmem [shape: f32[2,8,8,128], index: 0, kind: input, shape index: {}]   ;;  %s824_s1 = inlined_call_operand.vmem [shape: f32[2,128], index: 1, kind: input, shape index: {}]   ;;  %s825_s2 = inlined_call_operand.vmem [shape: f32[1,128], index: 2, kind: input, shape index: {}]   ;;  %s826_s3 = inlined_call_operand.vmem [shape: f32[1,128], index: 3, kind: input, shape index: {}]   ;;  %s827_s4 = inlined_call_operand.vmem [shape: f32[1,128], index: 4, kind: input, shape index: {}]   ;;  %s828_s5 = inlined_call_operand.vmem [shape: bf16[2,10,10,128], index: 5, kind: output, shape index: {}]  }
   0x1 LB: > { %s549_s19 = sadd.s32 4294967295, %s627_s18   ;;  %p553_p0 = scmp.ge.s32.totalorder %s627_s18, 1  ;;  %s627_s18 = sphi %s660_s18, %s15_s18  }
   0x2   : > { %p187_p1 = scmp.lt.s32.totalorder %s627_s18, 3 }
   0x4   : > { %p188_p2 = pnand %p553_p0, %p187_p1 }
   0x5   : > { %p215_p3 = scmp.lt.s32.totalorder (!%p188_p2), %s549_s19, 1  ;;  %v226_v0 = vld [vmem:[%s824_s1] sm:$0x1] (!%p188_p2)  ;;  %v228_v1 = vld [vmem:[%s824_s1 + $0x1] sm:$0x1] (!%p188_p2)  ;;  %v629_v6 = vmov (!%p188_p2), 0   ;;  %v249_v9 = vlaneseq (!%p188_p2) }
   0x6   : > { %191 = sbr.rel (%p188_p2) target bundleno = 66 (0x42), region = 40  ;;  %v227_v2 = vmul.f32 (!%p188_p2), 0.0078125, %v226_v0  ;;  %v229_v3 = vmul.f32 (!%p188_p2), 0.0078125, %v228_v1  ;;  %v233_v11 = vld [vmem:[%s825_s2] sm:$0x1] (!%p188_p2)  ;;  %vm440_vm0 = vcmask (!%p188_p2), 1043456  }
   0x7   : > { %v250_v10 = vshrl.u32 (!%p188_p2), %v249_v9, 7  ;;  %v237_v15 = vld [vmem:[%s826_s3] sm:$0x1] (!%p188_p2)  ;;  %vm441_vm1 = vsmask.f32 (!%p188_p2), 7938  ;;  %vm446_vm2 = vcmask (!%p188_p2), 1040384  }
   0x8   : > { %v230_v4 = vmul.f32 (!%p188_p2), %v227_v2, %v227_v2  ;;  %v715_v35 = vld [vmem:[%s827_s4] ss:$0 sm:$0xff] (!%p188_p2)  ;;  %vm447_vm3 = vsmask.f32 (!%p188_p2), 256  ;;  %vm734_vm10 = vmand (!%p188_p2), %vm440_vm0, %vm441_vm1 }
   0x9   : > { %v251_v12 = vsub.s32 (!%p188_p2), 0, %v250_v10  ;;  %vm744_vm11 = vmand (!%p188_p2), %vm446_vm2, %vm447_vm3 }
   0xa   : > { %v231_v5 = vsub.f32 (!%p188_p2), %v229_v3, %v230_v4 }
   0xc   : > { %v232_v7 = vmax.f32 (!%p188_p2), %v231_v5, 0.0 }
   0xd   : > { %s834_s19 = smov (!%p215_p3, %s549_s19), 1 }
   0xe   : > { %s609_s24 = smul.u32 80, %s834_s19  ;;  %v234_v8 = vadd.f32 1e-05, %v232_v7  ;;  %s600_s28 = sshll.u32 %s834_s19, 6 }
   0xf   : > { %s219_s6 = scalar_lea.vmem %s823_s0, %s600_s28 }
  0x10   : > { %s680_s27 = scalar_lea.vmem %s828_s5, %s609_s24  ;;  %619 = vrsqrt.f32 %v234_v8  ;;  %v240_v16 = vld [vmem:[%s219_s6] sm:$0xff]  ;;  %v241_v17 = vld [vmem:[%s219_s6 + $0x8] sm:$0xff]  ;;  %v242_v18 = vld [vmem:[%s219_s6 + $0x10] sm:$0xff] }
  0x11   : > { %309 = vst [vmem:[%s680_s27 + $0x8] sm:$0xf] %v629_v6  ;;  %307 = vst [vmem:[%s680_s27] sm:$0xf] %v629_v6  ;;  %v243_v19 = vld [vmem:[%s219_s6 + $0x18] sm:$0xff]  ;;  %v244_v22 = vld [vmem:[%s219_s6 + $0x20] sm:$0xff] }
  0x12   : > { %308 = vst [vmem:[%s680_s27 + $0x4] sm:$0x1] %v629_v6  ;;  %310 = vst [vmem:[%s680_s27 + $0xc] sm:$0x1] %v629_v6  ;;  %v245_v23 = vld [vmem:[%s219_s6 + $0x28] sm:$0xff]  ;;  %v246_v24 = vld [vmem:[%s219_s6 + $0x30] sm:$0xff] }
  0x13   : > { %311 = vst [vmem:[%s680_s27 + $0x10] sm:$0xf] %v629_v6  ;;  %312 = vst [vmem:[%s680_s27 + $0x14] sm:$0x1] %v629_v6  ;;  %v247_v25 = vld [vmem:[%s219_s6 + $0x38] sm:$0xff] }
  0x14   : > { %313 = vst [vmem:[%s680_s27 + $0x18] sm:$0xf] %v629_v6  ;;  %314 = vst [vmem:[%s680_s27 + $0x1c] sm:$0x1] %v629_v6 }
  0x15   : > { %315 = vst [vmem:[%s680_s27 + $0x20] sm:$0xf] %v629_v6  ;;  %316 = vst [vmem:[%s680_s27 + $0x24] sm:$0x1] %v629_v6 }
  0x16   : > { %317 = vst [vmem:[%s680_s27 + $0x28] sm:$0xf] %v629_v6  ;;  %318 = vst [vmem:[%s680_s27 + $0x2c] sm:$0x1] %v629_v6 }
  0x17   : > { %319 = vst [vmem:[%s680_s27 + $0x30] sm:$0xf] %v629_v6  ;;  %320 = vst [vmem:[%s680_s27 + $0x34] sm:$0x1] %v629_v6 }
  0x18   : > { %321 = vst [vmem:[%s680_s27 + $0x38] sm:$0xf] %v629_v6  ;;  %322 = vst [vmem:[%s680_s27 + $0x3c] sm:$0x1] %v629_v6  ;;  %v566_v63 = vld [vmem:[%s680_s27 + $0x8] sm:$0xf] }
  0x19   : > { %323 = vst [vmem:[%s680_s27 + $0x40] sm:$0xf] %v629_v6  ;;  %324 = vst [vmem:[%s680_s27 + $0x44] sm:$0x1] %v629_v6  ;;  %v568_v0 = vld [vmem:[%s680_s27 + $0xc] sm:$0x1] }
  0x1a   : > { %325 = vst [vmem:[%s680_s27 + $0x48] sm:$0xf] %v629_v6  ;;  %326 = vst [vmem:[%s680_s27 + $0x4c] sm:$0x1] %v629_v6  ;;  %v620_v13 = vpop.eup %619  ;;  %v570_v1 = vld [vmem:[%s680_s27 + $0x10] sm:$0xf] }
  0x1b   : > { %v236_v14 = vmul.f32 %v620_v13, %v233_v11  ;;  %v572_v9 = vld [vmem:[%s680_s27 + $0x14] sm:$0x1]  ;;  %v574_v10 = vld [vmem:[%s680_s27 + $0x18] sm:$0xf] }
  0x1d   : > { %v238_v20 = vmul.f32 %v236_v14, %v227_v2  ;;  %v252_v21 = vrot.slane %v236_v14, %v251_v12 }
  0x1f   : > { %v239_v26 = vsub.f32 %v237_v15, %v238_v20  ;;  %v254_v27 = vmul.f32 %v252_v21, %v240_v16  ;;  %v255_v28 = vmul.f32 %v252_v21, %v241_v17  ;;  %v256_v29 = vmul.f32 %v252_v21, %v242_v18  ;;  %v576_v15 = vld [vmem:[%s680_s27 + $0x1c] sm:$0x1] }
  0x20   : > { %v257_v30 = vmul.f32 %v252_v21, %v243_v19  ;;  %v258_v31 = vmul.f32 %v252_v21, %v244_v22  ;;  %v259_v32 = vmul.f32 %v252_v21, %v245_v23  ;;  %v260_v33 = vmul.f32 %v252_v21, %v246_v24  ;;  %v578_v22 = vld [vmem:[%s680_s27 + $0x20] sm:$0xf]  ;;  %v580_v23 = vld [vmem:[%s680_s27 + $0x24] sm:$0x1] }
  0x21   : > { %v266_v34 = vrot.slane %v239_v26, %v251_v12  ;;  %v261_v36 = vmul.f32 %v252_v21, %v247_v25 }
  0x23   : > { %v268_v37 = vadd.f32 %v266_v34, %v254_v27  ;;  %v269_v38 = vadd.f32 %v266_v34, %v255_v28  ;;  %v270_v39 = vadd.f32 %v266_v34, %v256_v29  ;;  %v271_v40 = vadd.f32 %v266_v34, %v257_v30 }
  0x24   : > { %v272_v41 = vadd.f32 %v266_v34, %v258_v31  ;;  %v717_v42 = vadd.f32 %v266_v34, %v259_v32  ;;  %v719_v43 = vadd.f32 %v266_v34, %v260_v33  ;;  %v721_v44 = vadd.f32 %v266_v34, %v261_v36 }
  0x25   : > { %vm276_vm4 = vcmp.gt.f32.partialorder %v268_v37, 0.0  ;;  %v291_v45 = vmul.f32 %v715_v35, %v268_v37  ;;  %vm277_vm5 = vcmp.gt.f32.partialorder %v269_v38, 0.0  ;;  %v292_v46 = vmul.f32 %v715_v35, %v269_v38 }
  0x26   : > { %vm278_vm6 = vcmp.gt.f32.partialorder %v270_v39, 0.0  ;;  %v293_v47 = vmul.f32 %v715_v35, %v270_v39  ;;  %vm279_vm7 = vcmp.gt.f32.partialorder %v271_v40, 0.0  ;;  %v294_v48 = vmul.f32 %v715_v35, %v271_v40 }
  0x27   : > { %v299_v49 = vsel %vm276_vm4, %v268_v37, %v291_v45  ;;  %v300_v50 = vsel %vm277_vm5, %v269_v38, %v292_v46  ;;  %vm280_vm8 = vcmp.gt.f32.partialorder %v272_v41, 0.0  ;;  %v295_v51 = vmul.f32 %v715_v35, %v272_v41 }
  0x28   : > { %v601_v52 = vpack.c.bf16 %v299_v49, %v299_v49  ;;  %v602_v53 = vpack.c.bf16 %v300_v50, %v300_v50  ;;  %v301_v54 = vsel %vm278_vm6, %v270_v39, %v293_v47  ;;  %v302_v55 = vsel %vm279_vm7, %v271_v40, %v294_v48  ;;  %v582_v48 = vld [vmem:[%s680_s27 + $0x28] sm:$0xf]  ;;  %v584_v49 = vld [vmem:[%s680_s27 + $0x2c] sm:$0x1] }
  0x29   : > { %v603_v56 = vpack.c.bf16 %v301_v54, %v301_v54  ;;  %v604_v57 = vpack.c.bf16 %v302_v55, %v302_v55  ;;  %v303_v58 = vsel %vm280_vm8, %v272_v41, %v295_v51  ;;  %vm281_vm9 = vcmp.gt.f32.partialorder %v717_v42, 0.0 }
  0x2a   : > { %v360_v59 = vshrl.u32 %v601_v52, 16  ;;  %v363_v60 = vshll.u32 %v601_v52, 16  ;;  %v368_v61 = vshrl.u32 %v602_v53, 16  ;;  %v371_v62 = vshll.u32 %v602_v53, 16 }
  0x2b   : > { %v376_v2 = vshrl.u32 %v603_v56, 16  ;;  %v379_v3 = vshll.u32 %v603_v56, 16  ;;  %v384_v4 = vshrl.u32 %v604_v57, 16  ;;  %v387_v5 = vshll.u32 %v604_v57, 16  ;;  %v586_v56 = vld [vmem:[%s680_s27 + $0x30] sm:$0xf] }
  0x2c   : > { %v362_v6 = vrot.slane %v360_v59, 7  ;;  %v370_v8 = vrot.slane %v368_v61, 7  ;;  %v605_v11 = vpack.c.bf16 %v303_v58, %v303_v58  ;;  %v296_v12 = vmul.f32 %v715_v35, %v717_v42  ;;  %v590_v61 = vld [vmem:[%s680_s27 + $0x38] sm:$0xf] }
  0x2d   : > { %v378_v14 = vrot.slane %v376_v2, 7  ;;  %v386_v16 = vrot.slane %v384_v4, 7  ;;  %vm282_vm12 = vcmp.gt.f32.partialorder %v719_v43, 0.0  ;;  %v297_v17 = vmul.f32 %v715_v35, %v719_v43 }
  0x2e   : > { %v365_v18 = vor.u32 %v363_v60, %v362_v6  ;;  %v366_v19 = vrot.slane %v362_v6, 4  ;;  %v373_v20 = vor.u32 %v371_v62, %v370_v8  ;;  %v374_v21 = vrot.slane %v370_v8, 4  ;;  %v588_v60 = vld [vmem:[%s680_s27 + $0x34] sm:$0x1]  ;;  %v592_v62 = vld [vmem:[%s680_s27 + $0x3c] sm:$0x1] }
  0x2f   : > { %v381_v24 = vor.u32 %v379_v3, %v378_v14  ;;  %v382_v25 = vrot.slane %v378_v14, 4  ;;  %v389_v26 = vor.u32 %v387_v5, %v386_v16  ;;  %v390_v27 = vrot.slane %v386_v16, 4 }
  0x30   : > { %v444_v28 = vsel %vm734_vm10, %v365_v18, %v566_v63  ;;  %v450_v29 = vsel %vm744_vm11, %v366_v19, %v568_v0  ;;  %v453_v30 = vsel %vm734_vm10, %v373_v20, %v570_v1  ;;  %v456_v31 = vsel %vm744_vm11, %v374_v21, %v572_v9 }
  0x31   : > { %567 = vst [vmem:[%s680_s27 + $0x8] sm:$0xf] %v444_v28  ;;  %569 = vst [vmem:[%s680_s27 + $0xc] sm:$0x1] %v450_v29  ;;  %v459_v32 = vsel %vm734_vm10, %v381_v24, %v574_v10  ;;  %v462_v33 = vsel %vm744_vm11, %v382_v25, %v576_v15  ;;  %v465_v34 = vsel %vm734_vm10, %v389_v26, %v578_v22  ;;  %v392_v37 = vshrl.u32 %v605_v11, 16 }
  0x32   : > { %571 = vst [vmem:[%s680_s27 + $0x10] sm:$0xf] %v453_v30  ;;  %573 = vst [vmem:[%s680_s27 + $0x14] sm:$0x1] %v456_v31  ;;  %v468_v36 = vsel %vm744_vm11, %v390_v27, %v580_v23  ;;  %v395_v38 = vshll.u32 %v605_v11, 16  ;;  %v304_v39 = vsel %vm281_vm9, %v717_v42, %v296_v12  ;;  %v305_v40 = vsel %vm282_vm12, %v719_v43, %v297_v17 }
  0x33   : > { %575 = vst [vmem:[%s680_s27 + $0x18] sm:$0xf] %v459_v32  ;;  %577 = vst [vmem:[%s680_s27 + $0x1c] sm:$0x1] %v462_v33  ;;  %v606_v41 = vpack.c.bf16 %v304_v39, %v304_v39  ;;  %v607_v45 = vpack.c.bf16 %v305_v40, %v305_v40  ;;  %vm283_vm13 = vcmp.gt.f32.partialorder %v721_v44, 0.0  ;;  %v298_v46 = vmul.f32 %v715_v35, %v721_v44 }
  0x34   : > { %579 = vst [vmem:[%s680_s27 + $0x20] sm:$0xf] %v465_v34  ;;  %581 = vst [vmem:[%s680_s27 + $0x24] sm:$0x1] %v468_v36  ;;  %v394_v47 = vrot.slane %v392_v37, 7 }
  0x35   : > { %v400_v50 = vshrl.u32 %v606_v41, 16  ;;  %v403_v42 = vshll.u32 %v606_v41, 16  ;;  %v408_v51 = vshrl.u32 %v607_v45, 16  ;;  %v411_v43 = vshll.u32 %v607_v45, 16  ;;  %v594_v10 = vld [vmem:[%s680_s27 + $0x40] sm:$0xf] }
  0x36   : > { %v397_v52 = vor.u32 %v395_v38, %v394_v47  ;;  %v398_v53 = vrot.slane %v394_v47, 4  ;;  %v306_v54 = vsel %vm283_vm13, %v721_v44, %v298_v46  ;;  %v596_v11 = vld [vmem:[%s680_s27 + $0x44] sm:$0x1] }
  0x37   : > { %v402_v55 = vrot.slane %v400_v50, 7  ;;  %v410_v57 = vrot.slane %v408_v51, 7  ;;  %v608_v35 = vpack.c.bf16 %v306_v54, %v306_v54 }
  0x38   : > { %v471_v58 = vsel %vm734_vm10, %v397_v52, %v582_v48  ;;  %v474_v59 = vsel %vm744_vm11, %v398_v53, %v584_v49 }
  0x39   : > { %583 = vst [vmem:[%s680_s27 + $0x28] sm:$0xf] %v471_v58  ;;  %585 = vst [vmem:[%s680_s27 + $0x2c] sm:$0x1] %v474_v59  ;;  %v405_v44 = vor.u32 %v403_v42, %v402_v55  ;;  %v406_v63 = vrot.slane %v402_v55, 4  ;;  %v413_v0 = vor.u32 %v411_v43, %v410_v57  ;;  %v414_v1 = vrot.slane %v410_v57, 4 }
  0x3a   : > { %v416_v2 = vshrl.u32 %v608_v35, 16  ;;  %v419_v3 = vshll.u32 %v608_v35, 16 }
  0x3b   : > { %v477_v4 = vsel %vm734_vm10, %v405_v44, %v586_v56  ;;  %v480_v5 = vsel %vm744_vm11, %v406_v63, %v588_v60  ;;  %v483_v6 = vsel %vm734_vm10, %v413_v0, %v590_v61  ;;  %v486_v8 = vsel %vm744_vm11, %v414_v1, %v592_v62 }
  0x3c   : > { %587 = vst [vmem:[%s680_s27 + $0x30] sm:$0xf] %v477_v4  ;;  %589 = vst [vmem:[%s680_s27 + $0x34] sm:$0x1] %v480_v5  ;;  %v418_v9 = vrot.slane %v416_v2, 7 }
  0x3d   : > { %591 = vst [vmem:[%s680_s27 + $0x38] sm:$0xf] %v483_v6  ;;  %593 = vst [vmem:[%s680_s27 + $0x3c] sm:$0x1] %v486_v8 }
  0x3e   : > { %v421_v12 = vor.u32 %v419_v3, %v418_v9  ;;  %v422_v14 = vrot.slane %v418_v9, 4 }
  0x40   : > { %v489_v15 = vsel %vm734_vm10, %v421_v12, %v594_v10  ;;  %v492_v16 = vsel %vm744_vm11, %v422_v14, %v596_v11 }
  0x41   : > { %595 = vst [vmem:[%s680_s27 + $0x40] sm:$0xf] %v489_v15  ;;  %597 = vst [vmem:[%s680_s27 + $0x44] sm:$0x1] %v492_v16 }
  0x42 PF: > { %s15_s18 = sadd.s32 1, %s627_s18  }
  0x43   : > { %p12_p4 = scmp.ge.s32.totalorder %s15_s18, 4  }
  0x45   :  { %14 = sbr.rel (!%p12_p4) target bundleno = 1 (0x1), region = 71 }

// kernel: vnet_down_block_forward.6
= control target key start
LH: loop header
LB: loop body
LE: loop exit
PB: predicated region body
PF: predicated region fallthrough
CT: control target
= control target key end

     0   :  { %s3163_s15 = smov 0   ;;  %s3749_s0 = inlined_call_operand.vmem [shape: bf16[2,10,10,128], index: 0, kind: input, shape index: {}]   ;;  %s3750_s1 = inlined_call_operand.vmem [shape: bf16[9,128,128], index: 1, kind: input, shape index: {}]   ;;  %s3751_s2 = inlined_call_operand.vmem [shape: f32[1,128], index: 2, kind: input, shape index: {}]   ;;  %s3752_s3 = inlined_call_operand.vmem [shape: f32[2,8,8,128], index: 3, kind: output, shape index: {0}]   ;;  %s3753_s4 = inlined_call_operand.vmem [shape: f32[2,128], index: 4, kind: output, shape index: {1}]  }
   0x1 LB: > { %s3169_s16 = sadd.s32 4294967295, %s3135_s15   ;;  %p2298_p0 = scmp.ge.s32.totalorder %s3135_s15, 1  ;;  %s3135_s15 = sphi %s3163_s15, %s15_s15  }
   0x2   : > { %p160_p1 = scmp.lt.s32.totalorder %s3135_s15, 3 }
   0x4   : > { %p161_p2 = pnand %p2298_p0, %p160_p1 }
   0x5   : > { %v3045_v0 = vld [vmem:[%s3750_s1 + $0x40] sm:$0xff] (!%p161_p2)   ;;  %p186_p3 = scmp.lt.s32.totalorder (!%p161_p2), %s3169_s16, 1  ;;  %v3047_v2 = vld [vmem:[%s3750_s1 + $0x48] sm:$0xff] (!%p161_p2)   ;;  %v3049_v4 = vld [vmem:[%s3750_s1 + $0x50] sm:$0xff] (!%p161_p2)   ;;  %vm229_vm0 = vsmask.f32 (!%p161_p2), 3328 }
   0x6   : > { %164 = sbr.rel (%p161_p2) target bundleno = 425 (0x1a9), region = 32  ;;  %v3046_v1 = vld [vmem:[%s3750_s1 + $0x100] sm:$0xff] (!%p161_p2)   ;;  %2739 = vmatprep.subr.bf16.mxu1 (!%p161_p2), %v3045_v0  ;;  %v3048_v3 = vld [vmem:[%s3750_s1 + $0x108] sm:$0xff] (!%p161_p2)   ;;  %v3050_v5 = vld [vmem:[%s3750_s1 + $0x110] sm:$0xff] (!%p161_p2)   ;;  %vm230_vm1 = vsmask.f32 (!%p161_p2), 7440 }
   0x7   : > { %2835 = vmatprep.subr.bf16.mxu0 (!%p161_p2), %v3046_v1  ;;  %2740 = vmatpush3.bf16.msra.mxu1 (!%p161_p2), %v3045_v0  ;;  %v3051_v6 = vld [vmem:[%s3750_s1 + $0x58] sm:$0xff] (!%p161_p2)   ;;  %v3053_v8 = vld [vmem:[%s3750_s1 + $0x60] sm:$0xff] (!%p161_p2)   ;;  %v3055_v10 = vld [vmem:[%s3750_s1 + $0x68] sm:$0xff] (!%p161_p2)   ;;  %vm651_vm3 = vcmask (!%p161_p2), 1042432   ;;  %vm652_vm4 = vcmask (!%p161_p2), 1046532   ;;  %p2627_p4 = scmp.ne.s32.totalorder (!%p161_p2), %s3169_s16, 0 }
   0x8   : > { %2836 = vmatpush3.bf16.msra.mxu0 (!%p161_p2), %v3046_v1  ;;  %2741 = vmatprep.subr.bf16.mxu1 (!%p161_p2), %v3047_v2  ;;  %v3052_v7 = vld [vmem:[%s3750_s1 + $0x118] sm:$0xff] (!%p161_p2)   ;;  %v3054_v9 = vld [vmem:[%s3750_s1 + $0x120] sm:$0xff] (!%p161_p2)   ;;  %v3056_v14 = vld [vmem:[%s3750_s1 + $0x128] sm:$0xff] (!%p161_p2)  }
   0x9   : > { %2837 = vmatprep.subr.bf16.mxu0 (!%p161_p2), %v3048_v3  ;;  %v3057_v22 = vld [vmem:[%s3750_s1 + $0x70] sm:$0xff] (!%p161_p2)   ;;  %v3059_v37 = vld [vmem:[%s3750_s1 + $0x78] sm:$0xff] (!%p161_p2)   ;;  %vm3256_vm2 = vmor (!%p161_p2), %vm229_vm0, %vm230_vm1 }
   0xa   : > { %v3058_v23 = vld [vmem:[%s3750_s1 + $0x130] sm:$0xff] (!%p161_p2)   ;;  %v3060_v47 = vld [vmem:[%s3750_s1 + $0x138] sm:$0xff] (!%p161_p2)   ;;  %v3061_v63 = vld [vmem:[%s3750_s1] sm:$0xff] (!%p161_p2)  }
   0xb   : > { %2742 = vmatpush3.bf16.msra.mxu1 (!%p161_p2), %v3047_v2  ;;  %v3288_v1 = vld [vmem:[%s3750_s1 + $0x140] sm:$0xff] (!%p161_p2)   ;;  %vm3430_vm5 = vmor (!%p161_p2), %vm651_vm3, %vm652_vm4 }
   0xc   : > { %2838 = vmatpush3.bf16.msra.mxu0 (!%p161_p2), %v3048_v3  ;;  %2743 = vmatprep.subr.bf16.mxu1 (!%p161_p2), %v3049_v4  ;;  %v3125_v38 = vld [vmem:[%s3750_s1 + $0x220] sm:$0xff] (!%p161_p2)  }
   0xd   : > { %s3193_s29 = scalar_select %p186_p3, %s3169_s16, 1  ;;  %2839 = vmatprep.subr.bf16.mxu0 %v3050_v5 }
   0xf   : > { %s3035_s8 = smul.u32 80, %s3193_s29  ;;  %2744 = vmatpush3.bf16.msra.mxu1 %v3049_v4 }
  0x10   : > { %2840 = vmatpush3.bf16.msra.mxu0 %v3050_v5  ;;  %2745 = vmatprep.subr.bf16.mxu1 %v3051_v6 }
  0x11   : > { %2841 = vmatprep.subr.bf16.mxu0 %v3052_v7  ;;  %s3211_s17 = scalar_lea.vmem %s3749_s0, %s3035_s8 }
  0x12   : > { %v3217_v11 = vld [vmem:[%s3211_s17] sm:$0xf]  ;;  %v3220_v12 = vld [vmem:[%s3211_s17 + $0x8] sm:$0xf]  ;;  %v3223_v13 = vld [vmem:[%s3211_s17 + $0x4] sm:$0x1] }
  0x13   : > { %2746 = vmatpush3.bf16.msra.mxu1 %v3051_v6  ;;  %v3229_v15 = vld [vmem:[%s3211_s17 + $0xc] sm:$0x1]  ;;  %v233_v16 = vshrl.u32 %v3217_v11, 16  ;;  %v236_v17 = vshll.u32 %v3217_v11, 16  ;;  %v242_v18 = vshll.u32 %v3223_v13, 16  ;;  %v247_v19 = vshrl.u32 %v3220_v12, 16 }
  0x14   : > { %2842 = vmatpush3.bf16.msra.mxu0 %v3052_v7  ;;  %2747 = vmatprep.subr.bf16.mxu1 %v3053_v8  ;;  %v250_v20 = vshll.u32 %v3220_v12, 16  ;;  %v256_v21 = vshll.u32 %v3229_v15, 16  ;;  %v2414_v30 = vld [vmem:[%s3211_s17 + $0x8] sm:$0xf]  ;;  %v3245_v31 = vld [vmem:[%s3211_s17 + $0xc] sm:$0x1] }
  0x15   : > { %2843 = vmatprep.subr.bf16.mxu0 %v3054_v9  ;;  %v235_v24 = vrot.slane %v233_v16, 4  ;;  %v238_v25 = vrot.slane %v236_v17, 5  ;;  %v244_v26 = vrot.slane %v242_v18, 5  ;;  %v249_v27 = vrot.slane %v247_v19, 4  ;;  %v2416_v33 = vld [vmem:[%s3211_s17 + $0x10] sm:$0xf] }
  0x16   : > { %v252_v28 = vrot.slane %v250_v20, 5  ;;  %v258_v29 = vrot.slane %v256_v21, 5  ;;  %v3249_v34 = vld [vmem:[%s3211_s17 + $0x14] sm:$0x1]  ;;  %v1028_v35 = vshrl.u32 %v2414_v30, 16  ;;  %v1031_v36 = vshll.u32 %v2414_v30, 16 }
  0x17   : > { %2748 = vmatpush3.bf16.msra.mxu1 %v3053_v8  ;;  %v239_v32 = vor.u32 %v238_v25, %v235_v24  ;;  %v1037_v40 = vshll.u32 %v3245_v31, 16  ;;  %v1042_v41 = vshrl.u32 %v2416_v33, 16  ;;  %v1045_v42 = vshll.u32 %v2416_v33, 16  ;;  %v3266_v51 = vld [vmem:[%s3211_s17 + $0x10] sm:$0xf] }
  0x18   : > { %2844 = vmatpush3.bf16.msra.mxu0 %v3054_v9  ;;  %2749 = vmatprep.subr.bf16.mxu1 %v3055_v10  ;;  %v253_v39 = vor.u32 %v252_v28, %v249_v27  ;;  %v1030_v44 = vrot.slane %v1028_v35, 4  ;;  %v1033_v45 = vrot.slane %v1031_v36, 5  ;;  %v1051_v46 = vshll.u32 %v3249_v34, 16  ;;  %v3271_v55 = vld [vmem:[%s3211_s17 + $0x18] sm:$0xf] }
  0x19   : > { %2845 = vmatprep.subr.bf16.mxu0 %v3056_v14  ;;  %v240_v43 = vrot.slane %v239_v32, 4  ;;  %v1044_v49 = vrot.slane %v1042_v41, 4  ;;  %v1047_v50 = vrot.slane %v1045_v42, 5  ;;  %v1039_v54 = vrot.slane %v1037_v40, 5  ;;  %v3274_v56 = vld [vmem:[%s3211_s17 + $0x14] sm:$0x1] }
  0x1a   : > { %v254_v48 = vrot.slane %v253_v39, 4  ;;  %v1034_v53 = vor.u32 %v1033_v45, %v1030_v44  ;;  %v1053_v59 = vrot.slane %v1051_v46, 5  ;;  %v3279_v60 = vld [vmem:[%s3211_s17 + $0x1c] sm:$0x1]  ;;  %v261_v61 = vshrl.u32 %v3266_v51, 16 }
  0x1b   : > { %2750 = vmatpush3.bf16.msra.mxu1 %v3055_v10  ;;  %v245_v52 = vsel %vm3256_vm2, %v240_v43, %v244_v26  ;;  %v1048_v58 = vor.u32 %v1047_v50, %v1044_v49  ;;  %v264_v2 = vshll.u32 %v3266_v51, 16  ;;  %v270_v3 = vshll.u32 %v3274_v56, 16  ;;  %v2418_v8 = vld [vmem:[%s3211_s17 + $0x18] sm:$0xf]  ;;  %v3299_v16 = vld [vmem:[%s3211_s17 + $0x1c] sm:$0x1] }
  0x1c   : > { %2846 = vmatpush3.bf16.msra.mxu0 %v3056_v14  ;;  %2751 = vmatprep.subr.bf16.mxu1 %v3057_v22  ;;  %v259_v57 = vsel %vm3256_vm2, %v254_v48, %v258_v29  ;;  %v1035_v0 = vrot.slane %v1034_v53, 4  ;;  %v263_v5 = vrot.slane %v261_v61, 4  ;;  %v275_v6 = vshrl.u32 %v3271_v55, 16  ;;  %v2420_v17 = vld [vmem:[%s3211_s17 + $0x20] sm:$0xf]  ;;  %v3063_v43 = vld [vmem:[%s3750_s1 + $0x8] sm:$0xff]  }
  0x1d   : > { %2847 = vmatprep.subr.bf16.mxu0 %v3058_v23  ;;  %v2318_v62 = vcombine.low %v245_v52, %v259_v57  ;;  %v1049_v4 = vrot.slane %v1048_v58, 4  ;;  %v278_v7 = vshll.u32 %v3271_v55, 16  ;;  %v266_v10 = vrot.slane %v264_v2, 5  ;;  %v3305_v21 = vld [vmem:[%s3211_s17 + $0x24] sm:$0x1] }
  0x1e   : > { %v1040_v9 = vsel %vm3256_vm2, %v1035_v0, %v1039_v54  ;;  %v284_v14 = vshll.u32 %v3279_v60, 16  ;;  %v277_v19 = vrot.slane %v275_v6, 4  ;;  %v272_v24 = vrot.slane %v270_v3, 5  ;;  %v3064_v54 = vld [vmem:[%s3750_s1 + $0x148] sm:$0xff]   ;;  %v3335_v0 = vld [vmem:[%s3211_s17 + $0x24] sm:$0x1] }
  0x1f   : > { %2752 = vmatpush3.bf16.msra.mxu1 %v3057_v22  ;;  %2755 = vmatprep.mubr.bf16.mxu1 %v2318_v62  ;;  %v1054_v18 = vsel %vm3256_vm2, %v1049_v4, %v1053_v59  ;;  %v280_v20 = vrot.slane %v278_v7, 5  ;;  %v1056_v27 = vshrl.u32 %v2418_v8, 16  ;;  %v1059_v28 = vshll.u32 %v2418_v8, 16  ;;  %v3065_v59 = vld [vmem:[%s3750_s1 + $0x10] sm:$0xff]   ;;  %v3329_v62 = vld [vmem:[%s3211_s17 + $0x20] sm:$0xf] }
  0x20   : > { %2848 = vmatpush3.bf16.msra.mxu0 %v3058_v23  ;;  %2753 = vmatprep.subr.bf16.mxu1 %v3059_v37  ;;  %v2446_v22 = vcombine.low %v1040_v9, %v1054_v18  ;;  %v267_v23 = vor.u32 %v266_v10, %v263_v5  ;;  %v286_v25 = vrot.slane %v284_v14, 5  ;;  %v1065_v29 = vshll.u32 %v3299_v16, 16  ;;  %v3338_v2 = vld [vmem:[%s3211_s17 + $0x2c] sm:$0x1]  ;;  %v3066_v9 = vld [vmem:[%s3750_s1 + $0x150] sm:$0xff]   ;;  %v3067_v10 = vld [vmem:[%s3750_s1 + $0x18] sm:$0xff]  }
  0x21   : > { %2849 = vmatprep.subr.bf16.mxu0 %v3060_v47  ;;  %v281_v26 = vor.u32 %v280_v20, %v277_v19  ;;  %v1070_v32 = vshrl.u32 %v2420_v17, 16  ;;  %v1073_v33 = vshll.u32 %v2420_v17, 16  ;;  %v1079_v35 = vshll.u32 %v3305_v21, 16 }
  0x22   : > { %2851 = vmatprep.mubr.bf16.mxu0 %v2446_v22  ;;  %v268_v30 = vrot.slane %v267_v23, 4  ;;  %v1061_v39 = vrot.slane %v1059_v28, 5  ;;  %v1067_v46 = vrot.slane %v1065_v29, 5  ;;  %v1319_v57 = vrot.slane %v3245_v31, 5  ;;  %v2422_v23 = vld [vmem:[%s3211_s17 + $0x28] sm:$0xf] }
  0x23   : > { %2754 = vmatpush3.bf16.msra.mxu1 %v3059_v37  ;;  %v282_v36 = vrot.slane %v281_v26, 4  ;;  %v1058_v37 = vrot.slane %v1056_v27, 4  ;;  %v1072_v41 = vrot.slane %v1070_v32, 4  ;;  %v1075_v42 = vrot.slane %v1073_v33, 5  ;;  %v3359_v26 = vld [vmem:[%s3211_s17 + $0x34] sm:$0x1] }
  0x24   : > { %2850 = vmatpush3.bf16.msra.mxu0 %v3060_v47  ;;  %2763 = vmatprep.subr.bf16.mxu1 %v3061_v63  ;;  %v273_v40 = vsel %vm3256_vm2, %v268_v30, %v272_v24  ;;  %v1081_v47 = vrot.slane %v1079_v35, 5  ;;  %v289_v3 = vshrl.u32 %v3329_v62, 16  ;;  %v292_v4 = vshll.u32 %v3329_v62, 16  ;;  %v3355_v24 = vld [vmem:[%s3211_s17 + $0x2c] sm:$0x1]  ;;  %v3068_v29 = vld [vmem:[%s3750_s1 + $0x158] sm:$0xff]  }
  0x25   : > { %2859 = vmatprep.subr.bf16.mxu0 %v3288_v1  ;;  %v287_v44 = vsel %vm3256_vm2, %v282_v36, %v286_v25  ;;  %v1062_v45 = vor.u32 %v1061_v39, %v1058_v37  ;;  %v1076_v49 = vor.u32 %v1075_v42, %v1072_v41  ;;  %v298_v5 = vshll.u32 %v3335_v0, 16  ;;  %v2424_v25 = vld [vmem:[%s3211_s17 + $0x30] sm:$0xf]  ;;  %v3069_v30 = vld [vmem:[%s3750_s1 + $0x20] sm:$0xff]  }
  0x26   : > { %v2319_v48 = vcombine.low %v273_v40, %v287_v44  ;;  %v312_v8 = vshll.u32 %v3338_v2, 16  ;;  %v291_v14 = vrot.slane %v289_v3, 4  ;;  %v294_v17 = vrot.slane %v292_v4, 5 }
  0x27   : > { %v1063_v50 = vrot.slane %v1062_v45, 4  ;;  %v1077_v52 = vrot.slane %v1076_v49, 4  ;;  %v300_v18 = vrot.slane %v298_v5, 5  ;;  %v1084_v27 = vshrl.u32 %v2422_v23, 16  ;;  %v2426_v5 = vld [vmem:[%s3211_s17 + $0x38] sm:$0xf] }
  0x28   : > { %2756 = vmatmul.mubr.bf16.vlgmr.msra.gmra.mrb[0].mxu1 %v2319_v48  ;;  %v314_v22 = vrot.slane %v312_v8, 5  ;;  %v1087_v28 = vshll.u32 %v2422_v23, 16  ;;  %v1093_v33 = vshll.u32 %v3355_v24, 16  ;;  %v1098_v35 = vshrl.u32 %v2424_v25, 16 }
  0x29   : > { %2764 = vmatpush3.bf16.msra.mxu1 %v3061_v63  ;;  %v1068_v53 = vsel %vm3256_vm2, %v1063_v50, %v1067_v46  ;;  %v1082_v58 = vsel %vm3256_vm2, %v1077_v52, %v1081_v47  ;;  %v3332_v63 = vld [vmem:[%s3211_s17 + $0x28] sm:$0xf]  ;;  %v1101_v36 = vshll.u32 %v2424_v25, 16  ;;  %v1086_v39 = vrot.slane %v1084_v27, 4  ;;  %v3370_v46 = vld [vmem:[%s3211_s17 + $0x30] sm:$0xf] }
  0x2a   : > { %2765 = vmatprep.subr.bf16.mxu1 %v3063_v43  ;;  %v2447_v61 = vcombine.low %v1068_v53, %v1082_v58  ;;  %v303_v6 = vshrl.u32 %v3332_v63, 16  ;;  %v306_v7 = vshll.u32 %v3332_v63, 16  ;;  %v1089_v40 = vrot.slane %v1087_v28, 5  ;;  %v3375_v50 = vld [vmem:[%s3211_s17 + $0x38] sm:$0xf] }
  0x2b   : > { %v1107_v41 = vshll.u32 %v3359_v26, 16  ;;  %v1100_v44 = vrot.slane %v1098_v35, 4  ;;  %v1103_v45 = vrot.slane %v1101_v36, 5  ;;  %v3378_v52 = vld [vmem:[%s3211_s17 + $0x34] sm:$0x1]  ;;  %v317_v53 = vshrl.u32 %v3370_v46, 16 }
  0x2c   : > { %2852 = vmatmul.mubr.bf16.vlgmr.msra.gmra.mrb[0].mxu0 %v2447_v61  ;;  %v305_v19 = vrot.slane %v303_v6, 4  ;;  %v308_v20 = vrot.slane %v306_v7, 5  ;;  %v1090_v48 = vor.u32 %v1089_v40, %v1086_v39  ;;  %v3387_v61 = vld [vmem:[%s3211_s17 + $0x3c] sm:$0x1]  ;;  %v320_v3 = vshll.u32 %v3370_v46, 16  ;;  %v3071_v6 = vld [vmem:[%s3750_s1 + $0x28] sm:$0xff]  }
  0x2d   : > { %2766 = vmatpush3.bf16.msra.mxu1 %v3063_v43  ;;  %2860 = vmatpush3.bf16.msra.mxu0 %v3288_v1  ;;  %v295_v1 = vor.u32 %v294_v17, %v291_v14  ;;  %v1095_v43 = vrot.slane %v1093_v33, 5  ;;  %v1109_v49 = vrot.slane %v1107_v41, 5  ;;  %v326_v4 = vshll.u32 %v3378_v52, 16  ;;  %v3397_v17 = vld [vmem:[%s3211_s17 + $0x3c] sm:$0x1] }
  0x2e   : > { %2767 = vmatprep.subr.bf16.mxu1 %v3065_v59  ;;  %2861 = vmatprep.subr.bf16.mxu0 %v3064_v54  ;;  %v309_v32 = vor.u32 %v308_v20, %v305_v19  ;;  %v1091_v8 = vrot.slane %v1090_v48, 4  ;;  %v331_v14 = vshrl.u32 %v3375_v50, 16  ;;  %v322_v19 = vrot.slane %v320_v3, 5  ;;  %v3405_v27 = vld [vmem:[%s3211_s17 + $0x44] sm:$0x1] }
  0x2f   : > { %v296_v37 = vrot.slane %v295_v1, 4  ;;  %v328_v20 = vrot.slane %v326_v4, 5  ;;  %v340_v25 = vshll.u32 %v3387_v61, 16  ;;  %v1112_v28 = vshrl.u32 %v2426_v5, 16 }
  0x30   : > { %v310_v42 = vrot.slane %v309_v32, 4  ;;  %v1096_v23 = vsel %vm3256_vm2, %v1091_v8, %v1095_v43  ;;  %v333_v1 = vrot.slane %v331_v14, 4  ;;  %v1115_v36 = vshll.u32 %v2426_v5, 16 }
  0x31   : > { %2768 = vmatpush3.bf16.msra.mxu1 %v3065_v59  ;;  %2862 = vmatpush3.bf16.msra.mxu0 %v3064_v54  ;;  %v301_v47 = vsel %vm3256_vm2, %v296_v37, %v300_v18  ;;  %v3070_v54 = vld [vmem:[%s3750_s1 + $0x160] sm:$0xff]   ;;  %v1104_v59 = vor.u32 %v1103_v45, %v1100_v44  ;;  %v3073_v37 = vld [vmem:[%s3750_s1 + $0x30] sm:$0xff]   ;;  %v342_v40 = vrot.slane %v340_v25, 5  ;;  %v1114_v41 = vrot.slane %v1112_v28, 4  ;;  %v2460_v25 = vld [vmem:[%s3211_s17 + $0x18] sm:$0xe] }
  0x32   : > { %2769 = vmatprep.subr.bf16.mxu1 %v3067_v10  ;;  %2863 = vmatprep.subr.bf16.mxu0 %v3066_v9  ;;  %v315_v58 = vsel %vm3256_vm2, %v310_v42, %v314_v22  ;;  %v334_v22 = vshll.u32 %v3375_v50, 16  ;;  %v1121_v42 = vshll.u32 %v3397_v17, 16  ;;  %v1117_v45 = vrot.slane %v1115_v36, 5  ;;  %v3076_v28 = vld [vmem:[%s3750_s1 + $0x178] sm:$0xff]  }
  0x33   : > { %v2320_v7 = vcombine.low %v301_v47, %v315_v58  ;;  %v1105_v18 = vrot.slane %v1104_v59, 4  ;;  %v1323_v47 = vrot.slane %v3249_v34, 5  ;;  %v1327_v48 = vrot.slane %v3299_v16, 5  ;;  %v3074_v58 = vld [vmem:[%s3750_s1 + $0x170] sm:$0xff]  }
  0x34   : > { %v336_v35 = vrot.slane %v334_v22, 5  ;;  %v1118_v4 = vor.u32 %v1117_v45, %v1114_v41  ;;  %v1123_v34 = vrot.slane %v1121_v42, 5  ;;  %v1331_v22 = vrot.slane %v3305_v21, 5  ;;  %v3079_v41 = vld [vmem:[%s3750_s1 + $0x180] sm:$0xff]  }
  0x35   : > { %2770 = vmatpush3.bf16.msra.mxu1 %v3067_v10  ;;  %2864 = vmatpush3.bf16.msra.mxu0 %v3066_v9  ;;  %v319_v10 = vrot.slane %v317_v53, 4  ;;  %v2428_v9 = vld [vmem:[%s3211_s17 + $0x40] sm:$0xf]  ;;  %v1110_v32 = vsel %vm3256_vm2, %v1105_v18, %v1109_v49  ;;  %v1135_v53 = vshll.u32 %v3405_v27, 16  ;;  %v2468_v36 = vrot.slane %v2460_v25, 9 }
  0x36   : > { %2771 = vmatprep.subr.bf16.mxu1 %v3069_v30  ;;  %2865 = vmatprep.subr.bf16.mxu0 %v3068_v29  ;;  %v2448_v39 = vcombine.low %v1096_v23, %v1110_v32  ;;  %v337_v44 = vor.u32 %v336_v35, %v333_v1  ;;  %v1129_v49 = vshll.u32 %v2428_v9, 16  ;;  %v1119_v18 = vrot.slane %v1118_v4, 4  ;;  %v3078_v35 = vld [vmem:[%s3750_s1 + $0x80] sm:$0xff]  }
  0x37   : > { %2759 = vmatprep.mubr.bf16.mxu1 %v2320_v7  ;;  %v323_v33 = vor.u32 %v322_v19, %v319_v10  ;;  %v2458_v7 = vld [vmem:[%s3211_s17 + $0x8] sm:$0xe]  ;;  %v2459_v10 = vld [vmem:[%s3211_s17 + $0x10] sm:$0xe]  ;;  %v2330_v19 = vcombine.low %v3217_v11, %v3220_v12  ;;  %v1137_v1 = vrot.slane %v1135_v53, 5  ;;  %v1328_v42 = vsel %vm3430_vm5, %v2468_v36, %v1327_v48 }
  0x38   : > { %2855 = vmatprep.mubr.bf16.mxu0 %v2448_v39  ;;  %v338_v3 = vrot.slane %v337_v44, 4  ;;  %v1131_v16 = vrot.slane %v1129_v49, 5  ;;  %v2466_v14 = vrot.slane %v2458_v7, 9  ;;  %v2461_v12 = vld [vmem:[%s3211_s17 + $0x20] sm:$0xe]  ;;  %v1124_v21 = vsel %vm3256_vm2, %v1119_v18, %v1123_v34  ;;  %v3083_v44 = vld [vmem:[%s3750_s1 + $0x90] sm:$0xff]  }
  0x39   : > { %2772 = vmatpush3.bf16.msra.mxu1 %v3069_v30  ;;  %2866 = vmatpush3.bf16.msra.mxu0 %v3068_v29  ;;  %v3072_v30 = vld [vmem:[%s3750_s1 + $0x168] sm:$0xff]   ;;  %v324_v43 = vrot.slane %v323_v33, 4  ;;  %v1126_v29 = vshrl.u32 %v2428_v9, 16  ;;  %v1335_v45 = vrot.slane %v3355_v24, 5  ;;  %v1343_v53 = vrot.slane %v3397_v17, 5  ;;  %v3087_v18 = vld [vmem:[%s3750_s1 + $0xa0] sm:$0xff]  }
  0x3a   : > { %2773 = vmatprep.subr.bf16.mxu1 %v3071_v6  ;;  %2867 = vmatprep.subr.bf16.mxu0 %v3070_v54  ;;  %v1320_v32 = vsel %vm3430_vm5, %v2466_v14, %v1319_v57  ;;  %v1347_v24 = vrot.slane %v3405_v27, 5  ;;  %v660_v34 = vrot.slane %v3229_v15, 5  ;;  %v664_v17 = vrot.slane %v3274_v56, 5  ;;  %v628_v15 = vld [vmem:[%s3211_s17 + $0x8] sm:$0xe] }
  0x3b   : > { %v329_v59 = vsel %vm3256_vm2, %v324_v43, %v328_v20  ;;  %v1128_v5 = vrot.slane %v1126_v29, 4  ;;  %v2467_v20 = vrot.slane %v2459_v10, 9  ;;  %v3081_v43 = vld [vmem:[%s3750_s1 + $0x88] sm:$0xff]   ;;  %v1339_v29 = vrot.slane %v3359_v26, 5  ;;  %v3084_v10 = vld [vmem:[%s3750_s1 + $0x190] sm:$0xff]  }
  0x3c   : > { %v2333_v26 = vcombine.low %v3370_v46, %v3375_v50  ;;  %v3085_v46 = vld [vmem:[%s3750_s1 + $0x98] sm:$0xff]   ;;  %v2343_v14 = vrot.slane %v628_v15, 9  ;;  %v672_v36 = vrot.slane %v3335_v0, 5  ;;  %v3097_v0 = vld [vmem:[%s3750_s1 + $0xc0] sm:$0xff]   ;;  %v3102_v15 = vld [vmem:[%s3750_s1 + $0x1c8] sm:$0xff]  }
  0x3d   : > { %2774 = vmatpush3.bf16.msra.mxu1 %v3071_v6  ;;  %2868 = vmatpush3.bf16.msra.mxu0 %v3070_v54  ;;  %v3075_v6 = vld [vmem:[%s3750_s1 + $0x38] sm:$0xff]   ;;  %v343_v54 = vsel %vm3256_vm2, %v338_v3, %v342_v40  ;;  %v1132_v23 = vor.u32 %v1131_v16, %v1128_v5  ;;  %v1324_v11 = vsel %vm3430_vm5, %v2467_v20, %v1323_v47  ;;  %v627_v16 = vld [vmem:[%s3211_s17] sm:$0xe] }
  0x3e   : > { %2775 = vmatprep.subr.bf16.mxu1 %v3073_v37  ;;  %2869 = vmatprep.subr.bf16.mxu0 %v3072_v30  ;;  %v2321_v9 = vcombine.low %v329_v59, %v343_v54  ;;  %v2490_v57 = vcombine.low %v1320_v32, %v1324_v11  ;;  %v2331_v40 = vcombine.low %v3266_v51, %v3271_v55  ;;  %v656_v55 = vrot.slane %v3223_v13, 5  ;;  %v2462_v13 = vld [vmem:[%s3211_s17 + $0x28] sm:$0xe]  ;;  %v2465_v59 = vld [vmem:[%s3211_s17 + $0x40] sm:$0xe]  ;;  %v3086_v20 = vld [vmem:[%s3750_s1 + $0x198] sm:$0xff]  }
  0x3f   : > { %v1133_v33 = vrot.slane %v1132_v23, 4  ;;  %v2332_v51 = vcombine.low %v3329_v62, %v3332_v63  ;;  %v3082_v62 = vld [vmem:[%s3750_s1 + $0x188] sm:$0xff]   ;;  %v2463_v63 = vld [vmem:[%s3211_s17 + $0x30] sm:$0xe]  ;;  %v2470_v48 = vrot.slane %v2462_v13, 9  ;;  %v2473_v7 = vrot.slane %v2465_v59, 9 }
  0x40   : > { %2760 = vmatmul.mubr.bf16.gmra.mrb[4].mxu1 %v2321_v9  ;;  %v2471_v49 = vrot.slane %v2463_v63, 9  ;;  %v2342_v56 = vrot.slane %v627_v16, 9  ;;  %v668_v54 = vrot.slane %v3279_v60, 5  ;;  %v661_v9 = vsel %vm3430_vm5, %v2343_v14, %v660_v34  ;;  %v629_v23 = vld [vmem:[%s3211_s17 + $0x10] sm:$0xe] }
  0x41   : > { %2776 = vmatpush3.bf16.msra.mxu1 %v3073_v37  ;;  %2870 = vmatpush3.bf16.msra.mxu0 %v3072_v30  ;;  %v1138_v31 = vsel %vm3256_vm2, %v1133_v33, %v1137_v1  ;;  %v2469_v37 = vrot.slane %v2461_v12, 9  ;;  %v1336_v3 = vsel %vm3430_vm5, %v2470_v48, %v1335_v45  ;;  %v630_v60 = vld [vmem:[%s3211_s17 + $0x18] sm:$0xe]  ;;  %v2344_v25 = vrot.slane %v629_v23, 9  ;;  %v3089_v33 = vld [vmem:[%s3750_s1 + $0xa8] sm:$0xff]  }
  0x42   : > { %2871 = vmatprep.subr.bf16.mxu0 %v3074_v58  ;;  %2777 = vmatprep.subr.bf16.mxu1 %v3075_v6  ;;  %v2449_v39 = vcombine.low %v1124_v21, %v1138_v31  ;;  %v1340_v4 = vsel %vm3430_vm5, %v2471_v49, %v1339_v29  ;;  %v3098_v32 = vld [vmem:[%s3211_s17 + $0x10] ss:$8 sps:$4 sm:$0xff]   ;;  %v680_v29 = vrot.slane %v3378_v52, 5  ;;  %v3101_v49 = vld [vmem:[%s3750_s1 + $0xc8] sm:$0xff]  }
  0x43   : > { %2779 = vmatprep.mubr.bf16.mxu1 %v2330_v19  ;;  %v1332_v30 = vsel %vm3430_vm5, %v2469_v37, %v1331_v22  ;;  %v2492_v27 = vcombine.low %v1336_v3, %v1340_v4  ;;  %v657_v19 = vsel %vm3430_vm5, %v2342_v56, %v656_v55  ;;  %v665_v11 = vsel %vm3430_vm5, %v2344_v25, %v664_v17  ;;  %v3092_v31 = vld [vmem:[%s3750_s1 + $0xb0] sm:$0xff]   ;;  %v3095_v37 = vld [vmem:[%s3750_s1 + $0xb8] sm:$0xff]   ;;  %v2544_v25 = vld [vmem:[%s3211_s17 + $0x28] sm:$0xf] }
  0x44   : > { %2856 = vmatmul.mubr.bf16.gmra.mrb[4].mxu0 %v2449_v39  ;;  %v2491_v47 = vcombine.low %v1328_v42, %v1332_v30  ;;  %v2366_v1 = vcombine.low %v657_v19, %v661_v9  ;;  %v631_v39 = vld [vmem:[%s3211_s17 + $0x20] sm:$0xe]  ;;  %v3096_v45 = vld [vmem:[%s3750_s1 + $0x1b8] sm:$0xff]   ;;  %v3104_v9 = vld [vmem:[%s3750_s1 + $0x1d0] sm:$0xff]  }
  0x45   : > { %2778 = vmatpush3.bf16.msra.mxu1 %v3075_v6  ;;  %2872 = vmatpush3.bf16.msra.mxu0 %v3074_v58  ;;  %v2464_v58 = vld [vmem:[%s3211_s17 + $0x38] sm:$0xe]  ;;  %v1348_v6 = vsel %vm3430_vm5, %v2473_v7, %v1347_v24  ;;  %v2346_v42 = vrot.slane %v631_v39, 9  ;;  %v3569_v24 = vld [vmem:[%s3211_s17 + $0x14] sm:$0x1] }
  0x46   : > { %2787 = vmatprep.subr.bf16.mxu1 %v3078_v35  ;;  %2873 = vmatprep.subr.bf16.mxu0 %v3076_v28  ;;  %v2472_v5 = vrot.slane %v2464_v58, 9  ;;  %v2540_v52 = vld [vmem:[%s3211_s17 + $0x18] sm:$0xf]  ;;  %v1700_v59 = vshll.u32 %v3569_v24, 16  ;;  %v3100_v7 = vld [vmem:[%s3211_s17 + $0x20] ss:$8 sps:$4 sm:$0xff]  }
  0x47   : > { %2875 = vmatprep.mubr.bf16.mxu0 %v2490_v57  ;;  %v3090_v57 = vld [vmem:[%s3750_s1 + $0x1a8] sm:$0xff]   ;;  %v1705_v3 = vshrl.u32 %v2540_v52, 16  ;;  %v1708_v4 = vshll.u32 %v2540_v52, 16  ;;  %v3111_v56 = vld [vmem:[%s3211_s17 + $0x30] ss:$8 sps:$4 sm:$0xff]  }
  0x48   : > { %2780 = vmatmul.mubr.bf16.vlgmr.msra.gmra.mrb[0].mxu1 %v2331_v40  ;;  %v1344_v50 = vsel %vm3430_vm5, %v2472_v5, %v1343_v53  ;;  %v632_v40 = vld [vmem:[%s3211_s17 + $0x28] sm:$0xe]  ;;  %v2538_v53 = vld [vmem:[%s3211_s17 + $0x10] sm:$0xf]  ;;  %v3105_v23 = vld [vmem:[%s3750_s1 + $0xd8] sm:$0xff]  }
  0x49   : > { %2874 = vmatpush3.bf16.msra.mxu0 %v3076_v28  ;;  %2788 = vmatpush3.bf16.msra.mxu1 %v3078_v35  ;;  %v2493_v22 = vcombine.low %v1344_v50, %v1348_v6  ;;  %v2345_v28 = vrot.slane %v630_v60, 9  ;;  %v3088_v35 = vld [vmem:[%s3750_s1 + $0x1a0] sm:$0xff]   ;;  %v2347_v30 = vrot.slane %v632_v40, 9  ;;  %v1694_v58 = vshll.u32 %v2538_v53, 16  ;;  %v3110_v52 = vld [vmem:[%s3750_s1 + $0x1e8] sm:$0xff]  }
  0x4a   : > { %2883 = vmatprep.subr.bf16.mxu0 %v3079_v41  ;;  %2789 = vmatprep.subr.bf16.mxu1 %v3081_v43  ;;  %v1707_v50 = vrot.slane %v1705_v3, 4  ;;  %v1710_v6 = vrot.slane %v1708_v4, 5 }
  0x4b   : > { %2783 = vmatprep.mubr.bf16.mxu1 %v2332_v51  ;;  %v669_v12 = vsel %vm3430_vm5, %v2345_v28, %v668_v54  ;;  %v633_v51 = vld [vmem:[%s3211_s17 + $0x30] sm:$0xe]  ;;  %v1696_v16 = vrot.slane %v1694_v58, 5  ;;  %v1702_v54 = vrot.slane %v1700_v59, 5 }
  0x4c   : > { %2876 = vmatmul.mubr.bf16.vlgmr.msra.gmra.mrb[0].mxu0 %v2491_v47  ;;  %v2367_v21 = vcombine.low %v665_v11, %v669_v12  ;;  %v684_v47 = vrot.slane %v3387_v61, 5  ;;  %v2348_v63 = vrot.slane %v633_v51, 9  ;;  %v3573_v61 = vld [vmem:[%s3211_s17 + $0x1c] sm:$0x1]  ;;  %v3113_v11 = vld [vmem:[%s3211_s17 + $0x40] ss:$8 sps:$4 sm:$0xff]  }
  0x4d   : > { %2790 = vmatpush3.bf16.msra.mxu1 %v3081_v43  ;;  %2884 = vmatpush3.bf16.msra.mxu0 %v3079_v41  ;;  %v676_v41 = vrot.slane %v3338_v2, 5  ;;  %v3093_v43 = vld [vmem:[%s3750_s1 + $0x1b0] sm:$0xff]   ;;  %v673_v2 = vsel %vm3430_vm5, %v2346_v42, %v672_v36  ;;  %v1714_v5 = vshll.u32 %v3573_v61, 16  ;;  %v1736_v36 = vshll.u32 %v2544_v25, 16  ;;  %v3618_v51 = vld [vmem:[%s3211_s17 + $0x24] sm:$0x1] }
  0x4e   : > { %2791 = vmatprep.subr.bf16.mxu1 %v3083_v44  ;;  %2885 = vmatprep.subr.bf16.mxu0 %v3082_v62  ;;  %v681_v34 = vsel %vm3430_vm5, %v2348_v63, %v680_v29  ;;  %v2546_v12 = vld [vmem:[%s3211_s17 + $0x30] sm:$0xf]  ;;  %v1728_v58 = vshll.u32 %v3618_v51, 16 }
  0x4f   : > { %2879 = vmatprep.mubr.bf16.mxu0 %v2492_v27  ;;  %v677_v55 = vsel %vm3430_vm5, %v2347_v30, %v676_v41  ;;  %v1716_v19 = vrot.slane %v1714_v5, 5  ;;  %v1747_v40 = vshrl.u32 %v2546_v12, 16  ;;  %v1750_v41 = vshll.u32 %v2546_v12, 16  ;;  %v2552_v5 = vld [vmem:[%s3211_s17 + $0x48] sm:$0xf]  ;;  %v3116_v12 = vld [vmem:[%s3750_s1 + $0x1f8] sm:$0xff]  }
  0x50   : > { %2784 = vmatmul.mubr.bf16.gmra.mrb[4].mxu1 %v2333_v26  ;;  %v2368_v13 = vcombine.low %v673_v2, %v677_v55  ;;  %v1691_v26 = vshrl.u32 %v2538_v53, 16  ;;  %v3621_v2 = vld [vmem:[%s3211_s17 + $0x2c] sm:$0x1]  ;;  %v1738_v29 = vrot.slane %v1736_v36, 5  ;;  %v2550_v53 = vld [vmem:[%s3211_s17 + $0x40] sm:$0xf] }
  0x51   : > { %2792 = vmatpush3.bf16.msra.mxu1 %v3083_v44  ;;  %2886 = vmatpush3.bf16.msra.mxu0 %v3082_v62  ;;  %v634_v44 = vld [vmem:[%s3211_s17 + $0x38] sm:$0xe]  ;;  %v3099_v62 = vld [vmem:[%s3750_s1 + $0x1c0] sm:$0xff]   ;;  %v1752_v63 = vrot.slane %v1750_v41, 5  ;;  %v1742_v59 = vshll.u32 %v3621_v2, 16 }
  0x52   : > { %2793 = vmatprep.subr.bf16.mxu1 %v3085_v46  ;;  %2887 = vmatprep.subr.bf16.mxu0 %v3084_v10  ;;  %v2349_v48 = vrot.slane %v634_v44, 9  ;;  %v1693_v27 = vrot.slane %v1691_v26, 4  ;;  %v3112_v26 = vld [vmem:[%s3750_s1 + $0xf0] sm:$0xff]  }
  0x53   : > { %2803 = vmatprep.mubr.bf16.mxu1 %v2366_v1  ;;  %v2542_v1 = vld [vmem:[%s3211_s17 + $0x20] sm:$0xf] }
  0x54   : > { %2880 = vmatmul.mubr.bf16.gmra.mrb[4].mxu0 %v2493_v22  ;;  %v685_v17 = vsel %vm3430_vm5, %v2349_v48, %v684_v47  ;;  %v3624_v47 = vld [vmem:[%s3211_s17 + $0x34] sm:$0x1] }
  0x55   : > { %2794 = vmatpush3.bf16.msra.mxu1 %v3085_v46  ;;  %2888 = vmatpush3.bf16.msra.mxu0 %v3084_v10  ;;  %v3103_v46 = vld [vmem:[%s3750_s1 + $0xd0] sm:$0xff]   ;;  %v1697_v10 = vor.u32 %v1696_v16, %v1693_v27  ;;  %v2369_v14 = vcombine.low %v681_v34, %v685_v17  ;;  %v1756_v3 = vshll.u32 %v3624_v47, 16  ;;  %v1775_v17 = vshrl.u32 %v2550_v53, 16 }
  0x56   : > { %2795 = vmatprep.subr.bf16.mxu1 %v3087_v18  ;;  %2889 = vmatprep.subr.bf16.mxu0 %v3086_v20  ;;  %v1778_v27 = vshll.u32 %v2550_v53, 16  ;;  %v2583_v53 = vld [vmem:[%s3211_s17 + $0x18] sm:$0xe] }
  0x57   : > { %2899 = vmatprep.mubr.bf16.mxu0 %v3098_v32  ;;  %v1698_v22 = vrot.slane %v1697_v10, 4 }
  0x59   : > { %2796 = vmatpush3.bf16.msra.mxu1 %v3087_v18  ;;  %2890 = vmatpush3.bf16.msra.mxu0 %v3086_v20  ;;  %v1711_v18 = vor.u32 %v1710_v6, %v1707_v50  ;;  %v3117_v20 = vld [vmem:[%s3211_s17 + $0x8] ss:$8 sps:$4 sm:$0xff]   ;;  %v1703_v28 = vsel %vm3256_vm2, %v1698_v22, %v1702_v54  ;;  %v1789_v50 = vshrl.u32 %v2552_v5, 16  ;;  %v1792_v6 = vshll.u32 %v2552_v5, 16 }
  0x5a   : > { %2797 = vmatprep.subr.bf16.mxu1 %v3089_v33  ;;  %2891 = vmatprep.subr.bf16.mxu0 %v3088_v35  ;;  %v2591_v5 = vrot.slane %v2583_v53, 9 }
  0x5b   : > { %v1712_v60 = vrot.slane %v1711_v18, 4  ;;  %v1744_v18 = vrot.slane %v1742_v59, 5  ;;  %v3122_v59 = vld [vmem:[%s3211_s17 + $0x38] ss:$8 sps:$4 sm:$0xff]  }
  0x5d   : > { %2798 = vmatpush3.bf16.msra.mxu1 %v3089_v33  ;;  %2892 = vmatpush3.bf16.msra.mxu0 %v3088_v35  ;;  %v1717_v32 = vsel %vm3256_vm2, %v1712_v60, %v1716_v19  ;;  %v3107_v33 = vld [vmem:[%s3750_s1 + $0xe0] sm:$0xff]   ;;  %v1719_v35 = vshrl.u32 %v2542_v1, 16  ;;  %v3651_v60 = vld [vmem:[%s3211_s17 + $0x4c] sm:$0x1] }
  0x5e   : > { %2799 = vmatprep.subr.bf16.mxu1 %v3092_v31  ;;  %2893 = vmatprep.subr.bf16.mxu0 %v3090_v57  ;;  %v2570_v39 = vcombine.low %v1703_v28, %v1717_v32  ;;  %v1791_v28 = vrot.slane %v1789_v50, 4  ;;  %v1794_v32 = vrot.slane %v1792_v6, 5  ;;  %v3126_v6 = vld [vmem:[%s3750_s1 + $0x228] sm:$0xff]  }
  0x5f   : > { %v1721_v55 = vrot.slane %v1719_v35, 4  ;;  %v3118_v35 = vld [vmem:[%s3211_s17 + $0x18] ss:$8 sps:$4 sm:$0xff]  }
  0x61   : > { %2800 = vmatpush3.bf16.msra.mxu1 %v3092_v31  ;;  %2894 = vmatpush3.bf16.msra.mxu0 %v3090_v57  ;;  %v1722_v31 = vshll.u32 %v2542_v1, 16  ;;  %v1733_v57 = vshrl.u32 %v2544_v25, 16  ;;  %v1777_v1 = vrot.slane %v1775_v17, 4  ;;  %v1780_v25 = vrot.slane %v1778_v27, 5 }
  0x62   : > { %2801 = vmatprep.subr.bf16.mxu1 %v3095_v37  ;;  %2895 = vmatprep.subr.bf16.mxu0 %v3093_v43 }
  0x63   : > { %v1724_v44 = vrot.slane %v1722_v31, 5 }
  0x65   : > { %2802 = vmatpush3.bf16.msra.mxu1 %v3095_v37  ;;  %2896 = vmatpush3.bf16.msra.mxu0 %v3093_v43  ;;  %v3106_v37 = vld [vmem:[%s3750_s1 + $0x1d8] sm:$0xff]   ;;  %v3108_v43 = vld [vmem:[%s3750_s1 + $0x1e0] sm:$0xff]  }
  0x66   : > { %2811 = vmatprep.subr.bf16.mxu1 %v3097_v0  ;;  %2897 = vmatprep.subr.bf16.mxu0 %v3096_v45 }
  0x68   : > { %2804 = vmatmul.mubr.bf16.vlgmr.msra.gmra.mrb[0].mxu1 %v2367_v21  ;;  %v2548_v21 = vld [vmem:[%s3211_s17 + $0x38] sm:$0xf] }
  0x69   : > { %2812 = vmatpush3.bf16.msra.mxu1 %v3097_v0  ;;  %2807 = vmatprep.mubr.bf16.mxu1 %v2368_v13  ;;  %v1761_v42 = vshrl.u32 %v2548_v21, 16  ;;  %v1764_v30 = vshll.u32 %v2548_v21, 16  ;;  %v3109_v0 = vld [vmem:[%s3750_s1 + $0xe8] sm:$0xff]   ;;  %v1749_v13 = vrot.slane %v1747_v40, 4  ;;  %v2586_v21 = vld [vmem:[%s3211_s17 + $0x30] sm:$0xe] }
  0x6a   : > { %2898 = vmatpush3.bf16.msra.mxu0 %v3096_v45  ;;  %2813 = vmatprep.subr.bf16.mxu1 %v3101_v49  ;;  %v1735_v45 = vrot.slane %v1733_v57, 4 }
  0x6b   : > { %2907 = vmatprep.subr.bf16.mxu0 %v3099_v62  ;;  %v1763_v48 = vrot.slane %v1761_v42, 4  ;;  %v1753_v16 = vor.u32 %v1752_v63, %v1749_v13  ;;  %v1781_v42 = vor.u32 %v1780_v25, %v1777_v1  ;;  %v1990_v25 = vrot.slane %v3618_v51, 5 }
  0x6c   : > { %v1739_v34 = vor.u32 %v1738_v29, %v1735_v45 }
  0x6d   : > { %2900 = vmatmul.mubr.bf16.vlgmr.msra.gmra.mrb[0].mxu0 %v3100_v7  ;;  %2814 = vmatpush3.bf16.msra.mxu1 %v3101_v49  ;;  %v1766_v49 = vrot.slane %v1764_v30, 5  ;;  %v1725_v7 = vor.u32 %v1724_v44, %v1721_v55  ;;  %v1754_v19 = vrot.slane %v1753_v16, 4  ;;  %v1795_v30 = vor.u32 %v1794_v32, %v1791_v28  ;;  %v3124_v16 = vld [vmem:[%s3750_s1 + $0x218] sm:$0xff]  }
  0x6e   : > { %2908 = vmatpush3.bf16.msra.mxu0 %v3099_v62  ;;  %2815 = vmatprep.subr.bf16.mxu1 %v3103_v46  ;;  %v3627_v62 = vld [vmem:[%s3211_s17 + $0x3c] sm:$0x1]  ;;  %v1740_v54 = vrot.slane %v1739_v34, 4  ;;  %v1998_v55 = vrot.slane %v3624_v47, 5  ;;  %v1994_v32 = vrot.slane %v3621_v2, 5 }
  0x6f   : > { %2909 = vmatprep.subr.bf16.mxu0 %v3102_v15  ;;  %2903 = vmatprep.mubr.bf16.mxu0 %v3111_v56  ;;  %v1770_v4 = vshll.u32 %v3627_v62, 16  ;;  %v3114_v56 = vld [vmem:[%s3750_s1 + $0x1f0] sm:$0xff]   ;;  %v1726_v10 = vrot.slane %v1725_v7, 4  ;;  %v2002_v45 = vrot.slane %v3627_v62, 5  ;;  %v1986_v7 = vrot.slane %v3573_v61, 5 }
  0x70   : > { %2808 = vmatmul.mubr.bf16.gmra.mrb[4].mxu1 %v2369_v14  ;;  %v1730_v14 = vrot.slane %v1728_v58, 5  ;;  %v1745_v57 = vsel %vm3256_vm2, %v1740_v54, %v1744_v18  ;;  %v3123_v58 = vld [vmem:[%s3750_s1 + $0x210] sm:$0xff]   ;;  %v2010_v54 = vrot.slane %v3651_v60, 5 }
  0x71   : > { %2816 = vmatpush3.bf16.msra.mxu1 %v3103_v46  ;;  %2827 = vmatprep.mubr.bf16.mxu1 %v3117_v20  ;;  %v1767_v46 = vor.u32 %v1766_v49, %v1763_v48  ;;  %v1758_v20 = vrot.slane %v1756_v3, 5  ;;  %v2582_v49 = vld [vmem:[%s3211_s17 + $0x10] sm:$0xe]  ;;  %v1987_v61 = vsel %vm3430_vm5, %v2591_v5, %v1986_v7 }
  0x72   : > { %2910 = vmatpush3.bf16.msra.mxu0 %v3102_v15  ;;  %2817 = vmatprep.subr.bf16.mxu1 %v3105_v23  ;;  %v3115_v15 = vld [vmem:[%s3750_s1 + $0xf8] sm:$0xff]   ;;  %v1731_v31 = vsel %vm3256_vm2, %v1726_v10, %v1730_v14  ;;  %v2590_v3 = vrot.slane %v2582_v49, 9  ;;  %v2589_v10 = vld [vmem:[%s3211_s17 + $0x48] sm:$0xe] }
  0x73   : > { %2911 = vmatprep.subr.bf16.mxu0 %v3104_v9  ;;  %v1768_v22 = vrot.slane %v1767_v46, 4  ;;  %v1759_v40 = vsel %vm3256_vm2, %v1754_v19, %v1758_v20  ;;  %v2571_v29 = vcombine.low %v1731_v31, %v1745_v57  ;;  %v2597_v19 = vrot.slane %v2589_v10, 9  ;;  %v3128_v20 = vld [vmem:[%s3750_s1 + $0x238] sm:$0xff]  }
  0x75   : > { %2818 = vmatpush3.bf16.msra.mxu1 %v3105_v23  ;;  %2904 = vmatmul.mubr.bf16.gmra.mrb[4].mxu0 %v3113_v11  ;;  %v3648_v23 = vld [vmem:[%s3211_s17 + $0x44] sm:$0x1] }
  0x76   : > { %2912 = vmatpush3.bf16.msra.mxu0 %v3104_v9  ;;  %2819 = vmatprep.subr.bf16.mxu1 %v3107_v33  ;;  %v1772_v9 = vrot.slane %v1770_v4, 5  ;;  %v3119_v11 = vld [vmem:[%s3750_s1 + $0x200] sm:$0xff]   ;;  %v1784_v36 = vshll.u32 %v3648_v23, 16  ;;  %v1982_v4 = vrot.slane %v3569_v24, 5  ;;  %v2006_v14 = vrot.slane %v3648_v23, 5 }
  0x77   : > { %2913 = vmatprep.subr.bf16.mxu0 %v3106_v37  ;;  %2923 = vmatprep.mubr.bf16.mxu0 %v2570_v39  ;;  %v3121_v39 = vld [vmem:[%s3211_s17 + $0x28] ss:$8 sps:$4 sm:$0xff]   ;;  %v2011_v23 = vsel %vm3430_vm5, %v2597_v19, %v2010_v54 }
  0x78   : > { %v1773_v41 = vsel %vm3256_vm2, %v1768_v22, %v1772_v9  ;;  %v1786_v63 = vrot.slane %v1784_v36, 5  ;;  %v1983_v24 = vsel %vm3430_vm5, %v2590_v3, %v1982_v4  ;;  %v2584_v22 = vld [vmem:[%s3211_s17 + $0x20] sm:$0xe]  ;;  %v2585_v9 = vld [vmem:[%s3211_s17 + $0x28] sm:$0xe] }
  0x79   : > { %2820 = vmatpush3.bf16.msra.mxu1 %v3107_v33  ;;  %v2587_v33 = vld [vmem:[%s3211_s17 + $0x38] sm:$0xe]  ;;  %v2572_v13 = vcombine.low %v1759_v40, %v1773_v41  ;;  %v2614_v50 = vcombine.low %v1983_v24, %v1987_v61  ;;  %v2593_v28 = vrot.slane %v2585_v9, 9 }
  0x7a   : > { %2914 = vmatpush3.bf16.msra.mxu0 %v3106_v37  ;;  %2821 = vmatprep.subr.bf16.mxu1 %v3109_v0  ;;  %v1798_v37 = vshll.u32 %v3651_v60, 16  ;;  %v2595_v44 = vrot.slane %v2587_v33, 9  ;;  %v2592_v60 = vrot.slane %v2584_v22, 9 }
  0x7b   : > { %2915 = vmatprep.subr.bf16.mxu0 %v3108_v43 }
  0x7c   : > { %v1800_v48 = vrot.slane %v1798_v37, 5  ;;  %v2003_v62 = vsel %vm3430_vm5, %v2595_v44, %v2002_v45  ;;  %v2626_v44 = vld [vmem:[%s3751_s2] ss:$0 sm:$0xff] }
  0x7d   : > { %2822 = vmatpush3.bf16.msra.mxu1 %v3109_v0  ;;  %v2594_v0 = vrot.slane %v2586_v21, 9  ;;  %v1995_v21 = vsel %vm3430_vm5, %v2593_v28, %v1994_v32 }
  0x7e   : > { %2916 = vmatpush3.bf16.msra.mxu0 %v3108_v43  ;;  %2823 = vmatprep.subr.bf16.mxu1 %v3112_v26  ;;  %v3120_v43 = vld [vmem:[%s3750_s1 + $0x208] sm:$0xff]  }
  0x7f   : > { %2917 = vmatprep.subr.bf16.mxu0 %v3110_v52  ;;  %v1999_v47 = vsel %vm3430_vm5, %v2594_v0, %v1998_v55 }
  0x80   : > { %v2616_v34 = vcombine.low %v1999_v47, %v2003_v62 }
  0x81   : > { %2824 = vmatpush3.bf16.msra.mxu1 %v3112_v26  ;;  %v1796_v26 = vrot.slane %v1795_v30, 4 }
  0x82   : > { %2918 = vmatpush3.bf16.msra.mxu0 %v3110_v52  ;;  %2825 = vmatprep.subr.bf16.mxu1 %v3115_v15  ;;  %v1782_v52 = vrot.slane %v1781_v42, 4 }
  0x83   : > { %2919 = vmatprep.subr.bf16.mxu0 %v3114_v56  ;;  %v1801_v27 = vsel %vm3256_vm2, %v1796_v26, %v1800_v48 }
  0x84   : > { %v1787_v17 = vsel %vm3256_vm2, %v1782_v52, %v1786_v63 }
  0x85   : > { %2826 = vmatpush3.bf16.msra.mxu1 %v3115_v15  ;;  %v2573_v46 = vcombine.low %v1787_v17, %v1801_v27  ;;  %v3127_v15 = vld [vmem:[%s3750_s1 + $0x230] sm:$0xff]  }
  0x86   : > { %2920 = vmatpush3.bf16.msra.mxu0 %v3114_v56  ;;  %2955 = vmatprep.subr.bf16.mxu1 %v3119_v11  ;;  %v2588_v56 = vld [vmem:[%s3211_s17 + $0x40] sm:$0xe]  ;;  %s2630_s17 = sshll.u32 %s3193_s29, 6 }
  0x87   : > { %2921 = vmatprep.subr.bf16.mxu0 %v3116_v12  ;;  %v2596_v18 = vrot.slane %v2588_v56, 9  ;;  %s195_s11 = scalar_lea.vmem %s3752_s3, %s2630_s17 }
  0x88   : > { %2828 = vmatmul.mubr.bf16.vlgmr.msra.gmra.mrb[0].mxu1 %v3118_v35 }
  0x89   : > { %2963 = vmatpush3.bf16.msra.mxu1 %v3119_v11  ;;  %2831 = vmatprep.mubr.bf16.mxu1 %v3121_v39  ;;  %v2007_v1 = vsel %vm3430_vm5, %v2596_v18, %v2006_v14 }
  0x8a   : > { %2922 = vmatpush3.bf16.msra.mxu0 %v3116_v12  ;;  %2956 = vmatprep.subr.bf16.mxu1 %v3120_v43  ;;  %v1991_v12 = vsel %vm3430_vm5, %v2592_v60, %v1990_v25 }
  0x8b   : > { %2931 = vmatprep.subr.bf16.mxu0 %v3119_v11  ;;  %v2615_v33 = vcombine.low %v1991_v12, %v1995_v21 }
  0x8d   : > { %2924 = vmatmul.mubr.bf16.vlgmr.msra.gmra.mrb[0].mxu0 %v2571_v29  ;;  %2964 = vmatpush3.bf16.msra.mxu1 %v3120_v43 }
  0x8e   : > { %2932 = vmatpush3.bf16.msra.mxu0 %v3119_v11  ;;  %2927 = vmatprep.mubr.bf16.mxu0 %v2572_v13  ;;  %v2617_v11 = vcombine.low %v2007_v1, %v2011_v23 }
  0x8f   : > { %2933 = vmatprep.subr.bf16.mxu0 %v3120_v43  ;;  %2957 = vmatprep.subr.bf16.mxu1 %v3123_v58 }
  0x90   : > { %2832 = vmatmul.mubr.bf16.gmra.mrb[4].mxu1 %v3122_v59 }
  0x91   : > { %2965 = vmatpush3.bf16.msra.mxu1 %v3123_v58  ;;  %2951 = vmatprep.mubr.bf16.mxu1 %v2616_v34 }
  0x92   : > { %2934 = vmatpush3.bf16.msra.mxu0 %v3120_v43  ;;  %2958 = vmatprep.subr.bf16.mxu1 %v3124_v16 }
  0x93   : > { %2935 = vmatprep.subr.bf16.mxu0 %v3123_v58 }
  0x95   : > { %2928 = vmatmul.mubr.bf16.gmra.mrb[4].mxu0 %v2573_v46  ;;  %2966 = vmatpush3.bf16.msra.mxu1 %v3124_v16 }
  0x96   : > { %2936 = vmatpush3.bf16.msra.mxu0 %v3123_v58  ;;  %2959 = vmatprep.subr.bf16.mxu1 %v3125_v38 }
  0x97   : > { %2937 = vmatprep.subr.bf16.mxu0 %v3124_v16  ;;  %2947 = vmatprep.mubr.bf16.mxu0 %v2614_v50 }
  0x99   : > { %2967 = vmatpush3.bf16.msra.mxu1 %v3125_v38 }
  0x9a   : > { %2938 = vmatpush3.bf16.msra.mxu0 %v3124_v16  ;;  %2960 = vmatprep.subr.bf16.mxu1 %v3126_v6 }
  0x9b   : > { %2939 = vmatprep.subr.bf16.mxu0 %v3125_v38 }
  0x9d   : > { %2968 = vmatpush3.bf16.msra.mxu1 %v3126_v6 }
  0x9e   : > { %2940 = vmatpush3.bf16.msra.mxu0 %v3125_v38  ;;  %2961 = vmatprep.subr.bf16.mxu1 %v3127_v15  ;;  %v3137_v38 = vmov (!%p2627_p4), 0.0  }
  0x9f   : > { %2941 = vmatprep.subr.bf16.mxu0 %v3126_v6  ;;  %2193 = vst [vmem:[%s3753_s4] sm:$0x3] (!%p2627_p4), %v3137_v38 }
  0xa1   : > { %2969 = vmatpush3.bf16.msra.mxu1 %v3127_v15 }
  0xa2   : > { %2942 = vmatpush3.bf16.msra.mxu0 %v3126_v6  ;;  %2962 = vmatprep.subr.bf16.mxu1 %v3128_v20 }
  0xa3   : > { %2943 = vmatprep.subr.bf16.mxu0 %v3127_v15 }
  0xa5   : > { %2970 = vmatpush3.bf16.msra.mxu1 %v3128_v20 }
  0xa6   : > { %2944 = vmatpush3.bf16.msra.mxu0 %v3127_v15 }
  0xa7   : > { %2945 = vmatprep.subr.bf16.mxu0 %v3128_v20 }
  0xa8   : > { %2952 = vmatmul.mubr.bf16.vlgmr.msra.gmra.mrb[8].mxu1 %v2617_v11 }
  0xaa   : > { %2946 = vmatpush3.bf16.msra.mxu0 %v3128_v20 }
  0xad   : > { %2948 = vmatmul.mubr.bf16.vlgmr.msra.gmra.mrb[0].mxu0 %v2615_v33 }
 0x15b   : > { %v2829_v35 = vpop.f32.mrb[0].mxu1 }
 0x15c   : > { %v972_v51 = vpop.f32.mrb[1].mxu1 }
 0x15d   : > { %v2830_v31 = vpop.f32.mrb[2].mxu1 }
 0x15e   : > { %v975_v2 = vpop.f32.mrb[3].mxu1 }
 0x163   : > { %v2833_v57 = vpop.f32.mrb[4].mxu1 }
 0x164   : > { %v988_v36 = vpop.f32.mrb[5].mxu1 }
 0x165   : > { %v2834_v37 = vpop.f32.mrb[6].mxu1 }
 0x166   : > { %v991_v39 = vpop.f32.mrb[7].mxu1 }
 0x168   : > { %v2929_v40 = vpop.f32.mrb[4].mxu0 }
 0x169   : > { %v2975_v41 = vadd.f32 %v2929_v40, %v2833_v57  ;;  %v1933_v42 = vpop.f32.mrb[5].mxu0 }
 0x16a   : > { %v2977_v30 = vadd.f32 %v1933_v42, %v988_v36  ;;  %v2930_v8 = vpop.f32.mrb[6].mxu0 }
 0x16b   : > { %v2979_v43 = vadd.f32 %v2930_v8, %v2834_v37  ;;  %v1936_v0 = vpop.f32.mrb[7].mxu0 }
 0x16c   : > { %v2981_v55 = vadd.f32 %v1936_v0, %v991_v39 }
 0x17b   : > { %v2953_v45 = vpop.f32.mrb[8].mxu1 }
 0x17c   : > { %v2976_v29 = vadd.f32 %v2975_v41, %v2953_v45  ;;  %v2143_v13 = vpop.f32.mrb[9].mxu1 }
 0x17d   : > { %v2978_v63 = vadd.f32 %v2977_v30, %v2143_v13  ;;  %v2954_v48 = vpop.f32.mrb[10].mxu1 }
 0x17e   : > { %v2179_v49 = vadd.f32 %v2976_v29, %v2626_v44  ;;  %v2980_v53 = vadd.f32 %v2979_v43, %v2954_v48  ;;  %v2146_v52 = vpop.f32.mrb[11].mxu1 }
 0x17f   : > { %v2177_v26 = vadd.f32 %v2978_v63, %v2626_v44  ;;  %v2982_v47 = vadd.f32 %v2981_v55, %v2146_v52 }
 0x180   : > { %v2949_v62 = vpop.f32.mrb[0].mxu0  ;;  %2187 = vst [vmem:[%s195_s11 + $0x30] sm:$0xff] %v2179_v49  ;;  %v2180_v58 = vadd.f32 %v2980_v53, %v2626_v44 }
 0x181   : > { %v2971_v59 = vadd.f32 %v2949_v62, %v2829_v35  ;;  %v2127_v3 = vpop.f32.mrb[1].mxu0  ;;  %2185 = vst [vmem:[%s195_s11 + $0x20] sm:$0xff] %v2177_v26  ;;  %v2178_v4 = vadd.f32 %v2982_v47, %v2626_v44 }
 0x182   : > { %v2972_v5 = vadd.f32 %v2127_v3, %v972_v51  ;;  %v2950_v7 = vpop.f32.mrb[2].mxu0  ;;  %2188 = vst [vmem:[%s195_s11 + $0x38] sm:$0xff] %v2180_v58  ;;  %2192 = sbr.rel (%p2627_p4) target bundleno = 393 (0x189), region = 36 }
 0x183   : > { %v2175_v34 = vadd.f32 %v2971_v59, %v2626_v44  ;;  %v2973_v17 = vadd.f32 %v2950_v7, %v2830_v31  ;;  %v2130_v27 = vpop.f32.mrb[3].mxu0  ;;  %2186 = vst [vmem:[%s195_s11 + $0x28] sm:$0xff] %v2178_v4 }
 0x184   : > { %v2173_v16 = vadd.f32 %v2972_v5, %v2626_v44  ;;  %v2974_v24 = vadd.f32 %v2130_v27, %v975_v2 }
 0x185   : > { %2183 = vst [vmem:[%s195_s11 + $0x10] sm:$0xff] %v2175_v34  ;;  %v2176_v61 = vadd.f32 %v2973_v17, %v2626_v44 }
 0x186   : > { %2181 = vst [vmem:[%s195_s11] sm:$0xff] %v2173_v16  ;;  %v2174_v46 = vadd.f32 %v2974_v24, %v2626_v44 }
 0x187   : > { %2184 = vst [vmem:[%s195_s11 + $0x18] sm:$0xff] %v2176_v61 }
 0x188   : > { %2182 = vst [vmem:[%s195_s11 + $0x8] sm:$0xff] %v2174_v46 }
 0x189 PF: > { %v2194_v50 = vadd.f32 %v2174_v46, %v2173_v16  ;;  %v2207_v6 = vmul.f32 %v2173_v16, %v2173_v16  ;;  %v2208_v15 = vmul.f32 %v2174_v46, %v2174_v46  ;;  %v2209_v56 = vmul.f32 %v2175_v34, %v2175_v34  ;;  %v2230_v8 = vld [vmem:[%s3753_s4] sm:$0x3] }
 0x18a   : > { %v2210_v14 = vmul.f32 %v2176_v61, %v2176_v61  ;;  %v2211_v19 = vmul.f32 %v2177_v26, %v2177_v26  ;;  %v2212_v9 = vmul.f32 %v2178_v4, %v2178_v4  ;;  %v2213_v60 = vmul.f32 %v2179_v49, %v2179_v49 }
 0x18b   : > { %v2195_v10 = vadd.f32 %v2194_v50, %v2175_v34  ;;  %v2215_v54 = vadd.f32 %v2208_v15, %v2207_v6  ;;  %v2214_v32 = vmul.f32 %v2180_v58, %v2180_v58  ;;  %vm2228_vm6 = vcmask 1040384  }
 0x18d   : > { %v2196_v18 = vadd.f32 %v2195_v10, %v2176_v61  ;;  %v2216_v20 = vadd.f32 %v2215_v54, %v2209_v56 }
 0x18f   : > { %v2197_v22 = vadd.f32 %v2196_v18, %v2177_v26  ;;  %v2217_v1 = vadd.f32 %v2216_v20, %v2210_v14 }
 0x191   : > { %v2198_v23 = vadd.f32 %v2197_v22, %v2178_v4  ;;  %v2218_v25 = vadd.f32 %v2217_v1, %v2211_v19 }
 0x193   : > { %v2199_v28 = vadd.f32 %v2198_v23, %v2179_v49  ;;  %v2219_v11 = vadd.f32 %v2218_v25, %v2212_v9 }
 0x195   : > { %v2200_v12 = vadd.f32 %v2199_v28, %v2180_v58  ;;  %v2220_v21 = vadd.f32 %v2219_v11, %v2213_v60 }
 0x197   : > { %v2201_v33 = vrot.slane %v2200_v12, 4  ;;  %v2221_v35 = vadd.f32 %v2220_v21, %v2214_v32 }
 0x199   : > { %v2202_v51 = vadd.f32 %v2201_v33, %v2200_v12  ;;  %v2222_v31 = vrot.slane %v2221_v35, 4 }
 0x19b   : > { %v2203_v2 = vrot.slane %v2202_v51, 2  ;;  %v2223_v57 = vadd.f32 %v2222_v31, %v2221_v35 }
 0x19d   : > { %v2204_v36 = vadd.f32 %v2203_v2, %v2202_v51  ;;  %v2224_v37 = vrot.slane %v2223_v57, 2 }
 0x19f   : > { %v2205_v39 = vrot.slane %v2204_v36, 1  ;;  %v2225_v40 = vadd.f32 %v2224_v37, %v2223_v57 }
 0x1a1   : > { %v2206_v41 = vadd.f32 %v2205_v39, %v2204_v36  ;;  %v2226_v42 = vrot.slane %v2225_v40, 1 }
 0x1a3   : > { %v2227_v30 = vadd.f32 %v2226_v42, %v2225_v40 }
 0x1a5   : > { %v2229_v43 = vsel %vm2228_vm6, %v2206_v41, %v2227_v30 }
 0x1a6   : > { %v2231_v0 = vadd.f32 %v2230_v8, %v2229_v43 }
 0x1a8   : > { %2232 = vst [vmem:[%s3753_s4] sm:$0x3] %v2231_v0 }
 0x1a9 PF: > { %s15_s15 = sadd.s32 1, %s3135_s15  }
 0x1aa   : > { %p12_p5 = scmp.ge.s32.totalorder %s15_s15, 4  }
 0x1ac   :  { %14 = sbr.rel (!%p12_p5) target bundleno = 1 (0x1), region = 84 }

</bundles_post_ra>
